<compile_context>
chip_gen: v7x
topology: tpu7x:2x2x1
jax: 0.10.0
libtpu: 0.0.40
codegen_flags: <defaults>
</compile_context>

<pallas_src>
import jax
import jax.numpy as jnp
from jax import lax
from jax.experimental import pallas as pl
from jax.experimental.pallas import tpu as pltpu


def lstm_kernel(x_ref, wih0_ref, bih0_ref, wihr_ref, bihr_ref,
                whh_ref, bhh_ref, wfc_ref, bfc_ref,
                out_ref, pg_ref, seq_ref):
    # x_ref:   (T, Bb, E)  f32   time-major embedded batch block
    # wih0:    (E, 4H) mm_dtype, bih0: (1, 4H) f32        layer-0 input weights
    # wihr:    (Lr, H, 4H) mm_dtype, bihr: (Lr, 1, 4H)    layers 1..L-1 input weights
    # whh:     (L, H, 4H) mm_dtype, bhh: (L, 1, 4H)       recurrent weights
    # wfc:     (H, O) mm_dtype, bfc: (1, O) f32           fc head
    # pg_ref:  (T*Bb, 4H) f32 scratch (hoisted pre-gates for the whole sequence)
    # seq_ref: (T*Bb, H)  f32 scratch (current layer's full output sequence)
    T, Bb, E = x_ref.shape
    L, H, G = whh_ref.shape          # G == 4*H
    mm_dtype = wih0_ref.dtype        # MXU operand dtype (bf16 on the perf path)

    # Fused full-lane gate activation constants, pre-broadcast ONCE to (Bb, G):
    # sigmoid(x) = 0.5*(1 + tanh(x/2)); g-gate lanes use plain tanh.
    lane = lax.broadcasted_iota(jnp.int32, (Bb, G), 1)
    is_g = (lane >= 2 * H) & (lane < 3 * H)
    scale = jnp.where(is_g, 1.0, 0.5).astype(jnp.float32)

    h = jnp.zeros((Bb, H), jnp.float32)

    for l in range(L):                               # static layer loop (L is small)
        wih = wih0_ref[...] if l == 0 else wihr_ref[l - 1]
        bih = bih0_ref[...] if l == 0 else bihr_ref[l - 1]
        whh_l = whh_ref[l]
        bias = bih + bhh_ref[l]                      # folded bias, once per layer

        # Hoisted input projection: one big (T*Bb, Din)@(Din, 4H) MXU matmul.
        if l == 0:
            layer_in = x_ref[...].reshape(T * Bb, E)   # Bb % 8 == 0 -> layout-preserving
        else:
            layer_in = seq_ref[...]
        pg_ref[...] = (jnp.dot(layer_in.astype(mm_dtype), wih,
                               preferred_element_type=jnp.float32) + bias)

        # TODO(synk): hold whh_l in MXU weight registers across all T steps
        # (pltpu.matmul_push_rhs / matmul_acc_lhs) and wavefront the (l, t) loops to
        # overlap the L layers' recurrent matmuls on the serial path.
        def step(t, carry):
            h, c = carry
            row = pl.multiple_of(t * Bb, 8)
            gates = (pg_ref[pl.ds(row, Bb), :]
                     + jnp.dot(h.astype(mm_dtype), whh_l,
                               preferred_element_type=jnp.float32))
            y = jnp.tanh(gates * scale)              # single full-width EUP op
            act = jnp.where(is_g, y, 0.5 * (1.0 + y))
            # TODO(synk): with H not a multiple of 128 these gate slices are sub-vreg
            # lane slices; for large models keep H % 128 == 0 or use a (4, Bb, H) layout.
            i_g = act[:, 0 * H:1 * H]
            f_g = act[:, 1 * H:2 * H]
            g_g = act[:, 2 * H:3 * H]
            o_g = act[:, 3 * H:4 * H]
            c = f_g * c + i_g * g_g
            h = o_g * jnp.tanh(c)
            if l < L - 1:                            # last layer only needs h[-1]
                seq_ref[pl.ds(row, Bb), :] = h
            return h, c

        h, c = lax.fori_loop(
            0, T, step,
            (jnp.zeros((Bb, H), jnp.float32), jnp.zeros((Bb, H), jnp.float32)),
            unroll=True if T <= 16 else 4)

    # fc on hidden[-1]  (dropout = identity in eval mode)
    out_ref[...] = (jnp.dot(h.astype(mm_dtype), wfc_ref[...],
                            preferred_element_type=jnp.float32) + bfc_ref[...])


def _choose_b_block(b_pad):
    # Prefer >= 2 batch blocks when the batch permits (v7x has 2 TensorCores),
    # cap block rows at 128; always a multiple of 8 dividing the padded batch.
    if b_pad >= 16:
        start = (min(128, b_pad // 2) // 8) * 8
        for bb in range(start, 7, -8):
            if b_pad % bb == 0:
                return bb
    return b_pad


def lstm_forward(token_ids, params, *, b_block=None, mm_dtype=jnp.bfloat16):
    # Embedding gather (plain-JAX glue) + eval-mode dropout (identity).
    emb = jnp.take(params['emb'], token_ids, axis=0)                 # (B, T, E)
    B, T, E = emb.shape
    L, H, G = params['whh'].shape
    O = params['w_fc'].shape[1]

    # Pad batch to a multiple of 8: the batch is the sublane dim of the in/out blocks,
    # so B < 8 would mean masked vld/vst every step and an almost-empty MXU M dim.
    B_pad = ((B + 7) // 8) * 8
    if B_pad != B:
        emb = jnp.pad(emb, ((0, B_pad - B), (0, 0), (0, 0)))
    x = jnp.transpose(emb, (1, 0, 2)).astype(jnp.float32)            # (T, B_pad, E)

    if b_block is None:
        b_block = _choose_b_block(B_pad)
    assert b_block % 8 == 0 and B_pad % b_block == 0
    nb = B_pad // b_block

    # MXU operands in bf16 (f32 accumulation); biases / elementwise math stay f32.
    wih0 = params['wih0'].astype(mm_dtype)
    wihr = params['wihr'].astype(mm_dtype)
    whh = params['whh'].astype(mm_dtype)
    wfc = params['w_fc'].astype(mm_dtype)

    def full_spec(arr):
        index_map = {2: lambda i: (0, 0), 3: lambda i: (0, 0, 0)}[arr.ndim]
        # Constant block index across the grid -> single buffer (no double-buffer waste).
        return pl.BlockSpec(arr.shape, index_map, pipeline_mode=pl.Buffered(1))

    in_specs = [
        pl.BlockSpec((T, b_block, E), lambda i: (0, i, 0)),
        full_spec(wih0), full_spec(params['bih0']),
        full_spec(wihr), full_spec(params['bihr']),
        full_spec(whh), full_spec(params['bhh']),
        full_spec(wfc), full_spec(params['b_fc']),
    ]
    out_spec = pl.BlockSpec((b_block, O), lambda i: (i, 0))

    # TODO(synk): for v7x (64 MiB VMEM) at large T*b_block*H, chunk the hoisted pre-gate
    # projection over time instead of materializing the full (T*b_block, 4H) slab.
    out = pl.pallas_call(
        lstm_kernel,
        out_shape=jax.ShapeDtypeStruct((B_pad, O), jnp.float32),
        grid=(nb,),
        in_specs=in_specs,
        out_specs=out_spec,
        scratch_shapes=[
            pltpu.VMEM((T * b_block, G), jnp.float32),   # hoisted pre-gates
            pltpu.VMEM((T * b_block, H), jnp.float32),   # intermediate-layer output seq
        ],
        compiler_params=pltpu.CompilerParams(
            dimension_semantics=("parallel",),
            vmem_limit_bytes=64 * 1024 * 1024),
    )(x, wih0, params['bih0'], wihr, params['bihr'],
      whh, params['bhh'], wfc, params['b_fc'])
    return out[:B]


def init_params(key, vocab_size, embedding_dim, hidden_dim, output_dim, num_layers):
    E, H = embedding_dim, hidden_dim
    Lr = max(num_layers - 1, 1)
    keys = jax.random.split(key, 9)

    def u(k, shape, bound):
        return jax.random.uniform(k, shape, jnp.float32, -bound, bound)

    kl = 1.0 / (H ** 0.5)   # torch LSTM / fc(fan_in=H) init bound
    return {
        'emb':  jax.random.normal(keys[0], (vocab_size, E), jnp.float32),
        'wih0': u(keys[1], (E, 4 * H), kl),
        'bih0': u(keys[2], (1, 4 * H), kl),
        'wihr': u(keys[3], (Lr, H, 4 * H), kl),
        'bihr': u(keys[4], (Lr, 1, 4 * H), kl),
        'whh':  u(keys[5], (num_layers, H, 4 * H), kl),
        'bhh':  u(keys[6], (num_layers, 1, 4 * H), kl),
        'w_fc': u(keys[7], (H, output_dim), kl),
        'b_fc': u(keys[8], (1, output_dim), kl),
    }


def reference_forward(token_ids, params):
    # Pure-JAX f32 reference of the same eval-mode forward pass (canonical sigmoid/tanh).
    emb = jnp.take(params['emb'], token_ids, axis=0).astype(jnp.float32)
    B, T, _ = emb.shape
    L, H, _ = params['whh'].shape
    x = emb
    h_last = None
    for l in range(L):
        wih = params['wih0'] if l == 0 else params['wihr'][l - 1]
        bih = params['bih0'] if l == 0 else params['bihr'][l - 1]
        whh, bhh = params['whh'][l], params['bhh'][l]
        h = jnp.zeros((B, H), jnp.float32)
        c = jnp.zeros((B, H), jnp.float32)
        outs = []
        for t in range(T):
            g = x[:, t, :] @ wih + h @ whh + bih + bhh
            i = jax.nn.sigmoid(g[:, :H])
            f = jax.nn.sigmoid(g[:, H:2 * H])
            gg = jnp.tanh(g[:, 2 * H:3 * H])
            o = jax.nn.sigmoid(g[:, 3 * H:])
            c = f * c + i * gg
            h = o * jnp.tanh(c)
            outs.append(h)
        x = jnp.stack(outs, axis=1)
        h_last = h
    return h_last @ params['w_fc'] + params['b_fc']


if __name__ == "__main__":
    vocab_size, embedding_dim, hidden_dim, output_dim, num_layers = 50, 32, 32, 5, 2
    B, T = 2, 8

    key = jax.random.PRNGKey(0)
    pkey, dkey = jax.random.split(key)
    params = init_params(pkey, vocab_size, embedding_dim, hidden_dim,
                         output_dim, num_layers)
    tokens = jax.random.randint(dkey, (B, T), 0, vocab_size, dtype=jnp.int32)

    ref = reference_forward(tokens, params)

    # Exactness check of the kernel algorithm (f32 matmul operands).
    out_f32 = jax.block_until_ready(lstm_forward(tokens, params, mm_dtype=jnp.float32))
    assert out_f32.shape == (B, output_dim)
    assert jnp.allclose(out_f32, ref, atol=1e-4, rtol=1e-4)

    # Performance path: bf16 MXU operands with f32 accumulation (looser tolerance).
    out_bf16 = jax.block_until_ready(lstm_forward(tokens, params))
    assert out_bf16.shape == (B, output_dim)
    assert jnp.allclose(out_bf16, ref, atol=5e-2, rtol=5e-2)

    print("KERNEL_OK")
</pallas_src>

<mosaic_0001>
module attributes {stable_mosaic.version = 11 : i64} {
  func.func @lstm_kernel(%arg0: i32, %arg1: memref<8x8x32xf32, #tpu.memory_space<vmem>>, %arg2: memref<32x128xf32, #tpu.memory_space<vmem>>, %arg3: memref<1x128xf32, #tpu.memory_space<vmem>>, %arg4: memref<1x32x128xf32, #tpu.memory_space<vmem>>, %arg5: memref<1x1x128xf32, #tpu.memory_space<vmem>>, %arg6: memref<2x32x128xf32, #tpu.memory_space<vmem>>, %arg7: memref<2x1x128xf32, #tpu.memory_space<vmem>>, %arg8: memref<32x5xf32, #tpu.memory_space<vmem>>, %arg9: memref<1x5xf32, #tpu.memory_space<vmem>>, %arg10: memref<8x5xf32, #tpu.memory_space<vmem>>, %arg11: memref<64x128xf32, #tpu.memory_space<vmem>>, %arg12: memref<64x32xf32, #tpu.memory_space<vmem>>) attributes {dimension_semantics = [#tpu.dimension_semantics<parallel>], iteration_bounds = array<i64: 1>, scalar_prefetch = 0 : i64, scratch_operands = 2 : i64, tpu.core_type = #tpu.core_type<tc>, window_params = [{transform_indices = @transform_0, window_bounds = array<i64: 8, 8, 32>}, {pipeline_mode = #tpu.pipeline_mode<synchronous>, transform_indices = @transform_1, window_bounds = array<i64: 32, 128>}, {pipeline_mode = #tpu.pipeline_mode<synchronous>, transform_indices = @transform_2, window_bounds = array<i64: 1, 128>}, {pipeline_mode = #tpu.pipeline_mode<synchronous>, transform_indices = @transform_3, window_bounds = array<i64: 1, 32, 128>}, {pipeline_mode = #tpu.pipeline_mode<synchronous>, transform_indices = @transform_4, window_bounds = array<i64: 1, 1, 128>}, {pipeline_mode = #tpu.pipeline_mode<synchronous>, transform_indices = @transform_5, window_bounds = array<i64: 2, 32, 128>}, {pipeline_mode = #tpu.pipeline_mode<synchronous>, transform_indices = @transform_6, window_bounds = array<i64: 2, 1, 128>}, {pipeline_mode = #tpu.pipeline_mode<synchronous>, transform_indices = @transform_7, window_bounds = array<i64: 32, 5>}, {pipeline_mode = #tpu.pipeline_mode<synchronous>, transform_indices = @transform_8, window_bounds = array<i64: 1, 5>}, {transform_indices = @transform_9, window_bounds = array<i64: 8, 5>}]} {
    %0 = tpu.iota {dimensions = array<i32: 1>} : vector<8x128xi32>
    %c64_i32 = arith.constant 64 : i32
    %1 = vector.broadcast %c64_i32 : i32 to vector<8x128xi32>
    %2 = arith.cmpi sge, %0, %1 : vector<8x128xi32>
    %c96_i32 = arith.constant 96 : i32
    %3 = vector.broadcast %c96_i32 : i32 to vector<8x128xi32>
    %4 = arith.cmpi slt, %0, %3 : vector<8x128xi32>
    %5 = arith.andi %2, %4 : vector<8x128xi1>
    %cst = arith.constant 1.000000e+00 : f32
    %cst_0 = arith.constant 5.000000e-01 : f32
    %6 = vector.broadcast %cst : f32 to vector<8x128xf32>
    %7 = vector.broadcast %cst_0 : f32 to vector<8x128xf32>
    %8 = arith.select %5, %6, %7 : vector<8x128xi1>, vector<8x128xf32>
    %c0 = arith.constant 0 : index
    %c0_1 = arith.constant 0 : index
    %9 = vector.load %arg2[%c0, %c0_1] : memref<32x128xf32, #tpu.memory_space<vmem>>, vector<32x128xf32>
    %c0_2 = arith.constant 0 : index
    %c0_3 = arith.constant 0 : index
    %10 = vector.load %arg3[%c0_2, %c0_3] : memref<1x128xf32, #tpu.memory_space<vmem>>, vector<1x128xf32>
    %c0_4 = arith.constant 0 : index
    %c0_5 = arith.constant 0 : index
    %c0_6 = arith.constant 0 : index
    %11 = vector.load %arg6[%c0_4, %c0_5, %c0_6] : memref<2x32x128xf32, #tpu.memory_space<vmem>>, vector<1x32x128xf32>
    %12 = vector.shape_cast %11 : vector<1x32x128xf32> to vector<32x128xf32>
    %c0_7 = arith.constant 0 : index
    %c0_8 = arith.constant 0 : index
    %c0_9 = arith.constant 0 : index
    %13 = vector.load %arg7[%c0_7, %c0_8, %c0_9] : memref<2x1x128xf32, #tpu.memory_space<vmem>>, vector<1x1x128xf32>
    %14 = vector.shape_cast %13 : vector<1x1x128xf32> to vector<1x128xf32>
    %15 = arith.addf %10, %14 : vector<1x128xf32>
    %c0_10 = arith.constant 0 : index
    %c0_11 = arith.constant 0 : index
    %c0_12 = arith.constant 0 : index
    %16 = vector.load %arg1[%c0_10, %c0_11, %c0_12] : memref<8x8x32xf32, #tpu.memory_space<vmem>>, vector<8x8x32xf32>
    %17 = vector.shape_cast %16 : vector<8x8x32xf32> to vector<64x32xf32>
    %cst_13 = arith.constant dense<0.000000e+00> : vector<64x128xf32>
    %18 = tpu.matmul %17, %9, %cst_13 {dimension_numbers = #tpu.dot_dimension_numbers<[1], [0], [0], [1], [0, 0, 1, 1], [], []>} : vector<64x32xf32>, vector<32x128xf32>, vector<64x128xf32> -> vector<64x128xf32>
    %19 = vector.broadcast %15 : vector<1x128xf32> to vector<64x128xf32>
    %20 = arith.addf %18, %19 : vector<64x128xf32>
    %c0_14 = arith.constant 0 : index
    %c0_15 = arith.constant 0 : index
    %21 = vector.load %arg11[%c0_14, %c0_15] : memref<64x128xf32, #tpu.memory_space<vmem>>, vector<64x128xf32>
    tpu.vector_store %arg11[%c0_14, %c0_15], %20 {strides = array<i32>} : memref<64x128xf32, #tpu.memory_space<vmem>>, vector<64x128xf32>,
    %cst_16 = arith.constant 0.000000e+00 : f32
    %22 = vector.broadcast %cst_16 : f32 to vector<8x32xf32>
    %cst_17 = arith.constant 0.000000e+00 : f32
    %23 = vector.broadcast %cst_17 : f32 to vector<8x32xf32>
    %c0_i32 = arith.constant 0 : i32
    %c8_i32 = arith.constant 8 : i32
    %24 = arith.muli %c0_i32, %c8_i32 : i32
    %25 = tpu.assume_multiple %24, 8 : i32
    %26 = arith.index_cast %25 : i32 to index
    %c0_18 = arith.constant 0 : index
    %27 = vector.load %arg11[%26, %c0_18] : memref<64x128xf32, #tpu.memory_space<vmem>>, vector<8x128xf32>
    %cst_19 = arith.constant dense<0.000000e+00> : vector<8x128xf32>
    %28 = tpu.matmul %22, %12, %cst_19 {dimension_numbers = #tpu.dot_dimension_numbers<[1], [0], [0], [1], [0, 0, 1, 1], [], []>} : vector<8x32xf32>, vector<32x128xf32>, vector<8x128xf32> -> vector<8x128xf32>
    %29 = arith.addf %27, %28 : vector<8x128xf32>
    %30 = arith.mulf %29, %8 : vector<8x128xf32>
    %31 = math.tanh %30 : vector<8x128xf32>
    %cst_20 = arith.constant 1.000000e+00 : f32
    %32 = vector.broadcast %cst_20 : f32 to vector<8x128xf32>
    %33 = arith.addf %32, %31 : vector<8x128xf32>
    %cst_21 = arith.constant 5.000000e-01 : f32
    %34 = vector.broadcast %cst_21 : f32 to vector<8x128xf32>
    %35 = arith.mulf %34, %33 : vector<8x128xf32>
    %36 = arith.select %5, %31, %35 : vector<8x128xi1>, vector<8x128xf32>
    %37 = vector.extract_strided_slice %36 {offsets = [0, 0], sizes = [8, 32], strides = [1, 1]} : vector<8x128xf32> to vector<8x32xf32>
    %38 = vector.extract_strided_slice %36 {offsets = [0, 32], sizes = [8, 32], strides = [1, 1]} : vector<8x128xf32> to vector<8x32xf32>
    %39 = vector.extract_strided_slice %36 {offsets = [0, 64], sizes = [8, 32], strides = [1, 1]} : vector<8x128xf32> to vector<8x32xf32>
    %40 = vector.extract_strided_slice %36 {offsets = [0, 96], sizes = [8, 32], strides = [1, 1]} : vector<8x128xf32> to vector<8x32xf32>
    %41 = arith.mulf %38, %23 : vector<8x32xf32>
    %42 = arith.mulf %37, %39 : vector<8x32xf32>
    %43 = arith.addf %41, %42 : vector<8x32xf32>
    %44 = math.tanh %43 : vector<8x32xf32>
    %45 = arith.mulf %40, %44 : vector<8x32xf32>
    %46 = arith.index_cast %25 : i32 to index
    %c0_22 = arith.constant 0 : index
    %47 = vector.load %arg12[%46, %c0_22] : memref<64x32xf32, #tpu.memory_space<vmem>>, vector<8x32xf32>
    tpu.vector_store %arg12[%46, %c0_22], %45 {strides = array<i32>} : memref<64x32xf32, #tpu.memory_space<vmem>>, vector<8x32xf32>,
    %c1_i32 = arith.constant 1 : i32
    %c8_i32_23 = arith.constant 8 : i32
    %48 = arith.muli %c1_i32, %c8_i32_23 : i32
    %49 = tpu.assume_multiple %48, 8 : i32
    %50 = arith.index_cast %49 : i32 to index
    %c0_24 = arith.constant 0 : index
    %51 = vector.load %arg11[%50, %c0_24] : memref<64x128xf32, #tpu.memory_space<vmem>>, vector<8x128xf32>
    %cst_25 = arith.constant dense<0.000000e+00> : vector<8x128xf32>
    %52 = tpu.matmul %45, %12, %cst_25 {dimension_numbers = #tpu.dot_dimension_numbers<[1], [0], [0], [1], [0, 0, 1, 1], [], []>} : vector<8x32xf32>, vector<32x128xf32>, vector<8x128xf32> -> vector<8x128xf32>
    %53 = arith.addf %51, %52 : vector<8x128xf32>
    %54 = arith.mulf %53, %8 : vector<8x128xf32>
    %55 = math.tanh %54 : vector<8x128xf32>
    %cst_26 = arith.constant 1.000000e+00 : f32
    %56 = vector.broadcast %cst_26 : f32 to vector<8x128xf32>
    %57 = arith.addf %56, %55 : vector<8x128xf32>
    %cst_27 = arith.constant 5.000000e-01 : f32
    %58 = vector.broadcast %cst_27 : f32 to vector<8x128xf32>
    %59 = arith.mulf %58, %57 : vector<8x128xf32>
    %60 = arith.select %5, %55, %59 : vector<8x128xi1>, vector<8x128xf32>
    %61 = vector.extract_strided_slice %60 {offsets = [0, 0], sizes = [8, 32], strides = [1, 1]} : vector<8x128xf32> to vector<8x32xf32>
    %62 = vector.extract_strided_slice %60 {offsets = [0, 32], sizes = [8, 32], strides = [1, 1]} : vector<8x128xf32> to vector<8x32xf32>
    %63 = vector.extract_strided_slice %60 {offsets = [0, 64], sizes = [8, 32], strides = [1, 1]} : vector<8x128xf32> to vector<8x32xf32>
    %64 = vector.extract_strided_slice %60 {offsets = [0, 96], sizes = [8, 32], strides = [1, 1]} : vector<8x128xf32> to vector<8x32xf32>
    %65 = arith.mulf %62, %43 : vector<8x32xf32>
    %66 = arith.mulf %61, %63 : vector<8x32xf32>
    %67 = arith.addf %65, %66 : vector<8x32xf32>
    %68 = math.tanh %67 : vector<8x32xf32>
    %69 = arith.mulf %64, %68 : vector<8x32xf32>
    %70 = arith.index_cast %49 : i32 to index
    %c0_28 = arith.constant 0 : index
    %71 = vector.load %arg12[%70, %c0_28] : memref<64x32xf32, #tpu.memory_space<vmem>>, vector<8x32xf32>
    tpu.vector_store %arg12[%70, %c0_28], %69 {strides = array<i32>} : memref<64x32xf32, #tpu.memory_space<vmem>>, vector<8x32xf32>,
    %c2_i32 = arith.constant 2 : i32
    %c8_i32_29 = arith.constant 8 : i32
    %72 = arith.muli %c2_i32, %c8_i32_29 : i32
    %73 = tpu.assume_multiple %72, 8 : i32
    %74 = arith.index_cast %73 : i32 to index
    %c0_30 = arith.constant 0 : index
    %75 = vector.load %arg11[%74, %c0_30] : memref<64x128xf32, #tpu.memory_space<vmem>>, vector<8x128xf32>
    %cst_31 = arith.constant dense<0.000000e+00> : vector<8x128xf32>
    %76 = tpu.matmul %69, %12, %cst_31 {dimension_numbers = #tpu.dot_dimension_numbers<[1], [0], [0], [1], [0, 0, 1, 1], [], []>} : vector<8x32xf32>, vector<32x128xf32>, vector<8x128xf32> -> vector<8x128xf32>
    %77 = arith.addf %75, %76 : vector<8x128xf32>
    %78 = arith.mulf %77, %8 : vector<8x128xf32>
    %79 = math.tanh %78 : vector<8x128xf32>
    %cst_32 = arith.constant 1.000000e+00 : f32
    %80 = vector.broadcast %cst_32 : f32 to vector<8x128xf32>
    %81 = arith.addf %80, %79 : vector<8x128xf32>
    %cst_33 = arith.constant 5.000000e-01 : f32
    %82 = vector.broadcast %cst_33 : f32 to vector<8x128xf32>
    %83 = arith.mulf %82, %81 : vector<8x128xf32>
    %84 = arith.select %5, %79, %83 : vector<8x128xi1>, vector<8x128xf32>
    %85 = vector.extract_strided_slice %84 {offsets = [0, 0], sizes = [8, 32], strides = [1, 1]} : vector<8x128xf32> to vector<8x32xf32>
    %86 = vector.extract_strided_slice %84 {offsets = [0, 32], sizes = [8, 32], strides = [1, 1]} : vector<8x128xf32> to vector<8x32xf32>
    %87 = vector.extract_strided_slice %84 {offsets = [0, 64], sizes = [8, 32], strides = [1, 1]} : vector<8x128xf32> to vector<8x32xf32>
    %88 = vector.extract_strided_slice %84 {offsets = [0, 96], sizes = [8, 32], strides = [1, 1]} : vector<8x128xf32> to vector<8x32xf32>
    %89 = arith.mulf %86, %67 : vector<8x32xf32>
    %90 = arith.mulf %85, %87 : vector<8x32xf32>
    %91 = arith.addf %89, %90 : vector<8x32xf32>
    %92 = math.tanh %91 : vector<8x32xf32>
    %93 = arith.mulf %88, %92 : vector<8x32xf32>
    %94 = arith.index_cast %73 : i32 to index
    %c0_34 = arith.constant 0 : index
    %95 = vector.load %arg12[%94, %c0_34] : memref<64x32xf32, #tpu.memory_space<vmem>>, vector<8x32xf32>
    tpu.vector_store %arg12[%94, %c0_34], %93 {strides = array<i32>} : memref<64x32xf32, #tpu.memory_space<vmem>>, vector<8x32xf32>,
    %c3_i32 = arith.constant 3 : i32
    %c8_i32_35 = arith.constant 8 : i32
    %96 = arith.muli %c3_i32, %c8_i32_35 : i32
    %97 = tpu.assume_multiple %96, 8 : i32
    %98 = arith.index_cast %97 : i32 to index
    %c0_36 = arith.constant 0 : index
    %99 = vector.load %arg11[%98, %c0_36] : memref<64x128xf32, #tpu.memory_space<vmem>>, vector<8x128xf32>
    %cst_37 = arith.constant dense<0.000000e+00> : vector<8x128xf32>
    %100 = tpu.matmul %93, %12, %cst_37 {dimension_numbers = #tpu.dot_dimension_numbers<[1], [0], [0], [1], [0, 0, 1, 1], [], []>} : vector<8x32xf32>, vector<32x128xf32>, vector<8x128xf32> -> vector<8x128xf32>
    %101 = arith.addf %99, %100 : vector<8x128xf32>
    %102 = arith.mulf %101, %8 : vector<8x128xf32>
    %103 = math.tanh %102 : vector<8x128xf32>
    %cst_38 = arith.constant 1.000000e+00 : f32
    %104 = vector.broadcast %cst_38 : f32 to vector<8x128xf32>
    %105 = arith.addf %104, %103 : vector<8x128xf32>
    %cst_39 = arith.constant 5.000000e-01 : f32
    %106 = vector.broadcast %cst_39 : f32 to vector<8x128xf32>
    %107 = arith.mulf %106, %105 : vector<8x128xf32>
    %108 = arith.select %5, %103, %107 : vector<8x128xi1>, vector<8x128xf32>
    %109 = vector.extract_strided_slice %108 {offsets = [0, 0], sizes = [8, 32], strides = [1, 1]} : vector<8x128xf32> to vector<8x32xf32>
    %110 = vector.extract_strided_slice %108 {offsets = [0, 32], sizes = [8, 32], strides = [1, 1]} : vector<8x128xf32> to vector<8x32xf32>
    %111 = vector.extract_strided_slice %108 {offsets = [0, 64], sizes = [8, 32], strides = [1, 1]} : vector<8x128xf32> to vector<8x32xf32>
    %112 = vector.extract_strided_slice %108 {offsets = [0, 96], sizes = [8, 32], strides = [1, 1]} : vector<8x128xf32> to vector<8x32xf32>
    %113 = arith.mulf %110, %91 : vector<8x32xf32>
    %114 = arith.mulf %109, %111 : vector<8x32xf32>
    %115 = arith.addf %113, %114 : vector<8x32xf32>
    %116 = math.tanh %115 : vector<8x32xf32>
    %117 = arith.mulf %112, %116 : vector<8x32xf32>
    %118 = arith.index_cast %97 : i32 to index
    %c0_40 = arith.constant 0 : index
    %119 = vector.load %arg12[%118, %c0_40] : memref<64x32xf32, #tpu.memory_space<vmem>>, vector<8x32xf32>
    tpu.vector_store %arg12[%118, %c0_40], %117 {strides = array<i32>} : memref<64x32xf32, #tpu.memory_space<vmem>>, vector<8x32xf32>,
    %c4_i32 = arith.constant 4 : i32
    %c8_i32_41 = arith.constant 8 : i32
    %120 = arith.muli %c4_i32, %c8_i32_41 : i32
    %121 = tpu.assume_multiple %120, 8 : i32
    %122 = arith.index_cast %121 : i32 to index
    %c0_42 = arith.constant 0 : index
    %123 = vector.load %arg11[%122, %c0_42] : memref<64x128xf32, #tpu.memory_space<vmem>>, vector<8x128xf32>
    %cst_43 = arith.constant dense<0.000000e+00> : vector<8x128xf32>
    %124 = tpu.matmul %117, %12, %cst_43 {dimension_numbers = #tpu.dot_dimension_numbers<[1], [0], [0], [1], [0, 0, 1, 1], [], []>} : vector<8x32xf32>, vector<32x128xf32>, vector<8x128xf32> -> vector<8x128xf32>
    %125 = arith.addf %123, %124 : vector<8x128xf32>
    %126 = arith.mulf %125, %8 : vector<8x128xf32>
    %127 = math.tanh %126 : vector<8x128xf32>
    %cst_44 = arith.constant 1.000000e+00 : f32
    %128 = vector.broadcast %cst_44 : f32 to vector<8x128xf32>
    %129 = arith.addf %128, %127 : vector<8x128xf32>
    %cst_45 = arith.constant 5.000000e-01 : f32
    %130 = vector.broadcast %cst_45 : f32 to vector<8x128xf32>
    %131 = arith.mulf %130, %129 : vector<8x128xf32>
    %132 = arith.select %5, %127, %131 : vector<8x128xi1>, vector<8x128xf32>
    %133 = vector.extract_strided_slice %132 {offsets = [0, 0], sizes = [8, 32], strides = [1, 1]} : vector<8x128xf32> to vector<8x32xf32>
    %134 = vector.extract_strided_slice %132 {offsets = [0, 32], sizes = [8, 32], strides = [1, 1]} : vector<8x128xf32> to vector<8x32xf32>
    %135 = vector.extract_strided_slice %132 {offsets = [0, 64], sizes = [8, 32], strides = [1, 1]} : vector<8x128xf32> to vector<8x32xf32>
    %136 = vector.extract_strided_slice %132 {offsets = [0, 96], sizes = [8, 32], strides = [1, 1]} : vector<8x128xf32> to vector<8x32xf32>
    %137 = arith.mulf %134, %115 : vector<8x32xf32>
    %138 = arith.mulf %133, %135 : vector<8x32xf32>
    %139 = arith.addf %137, %138 : vector<8x32xf32>
    %140 = math.tanh %139 : vector<8x32xf32>
    %141 = arith.mulf %136, %140 : vector<8x32xf32>
    %142 = arith.index_cast %121 : i32 to index
    %c0_46 = arith.constant 0 : index
    %143 = vector.load %arg12[%142, %c0_46] : memref<64x32xf32, #tpu.memory_space<vmem>>, vector<8x32xf32>
    tpu.vector_store %arg12[%142, %c0_46], %141 {strides = array<i32>} : memref<64x32xf32, #tpu.memory_space<vmem>>, vector<8x32xf32>,
    %c5_i32 = arith.constant 5 : i32
    %c8_i32_47 = arith.constant 8 : i32
    %144 = arith.muli %c5_i32, %c8_i32_47 : i32
    %145 = tpu.assume_multiple %144, 8 : i32
    %146 = arith.index_cast %145 : i32 to index
    %c0_48 = arith.constant 0 : index
    %147 = vector.load %arg11[%146, %c0_48] : memref<64x128xf32, #tpu.memory_space<vmem>>, vector<8x128xf32>
    %cst_49 = arith.constant dense<0.000000e+00> : vector<8x128xf32>
    %148 = tpu.matmul %141, %12, %cst_49 {dimension_numbers = #tpu.dot_dimension_numbers<[1], [0], [0], [1], [0, 0, 1, 1], [], []>} : vector<8x32xf32>, vector<32x128xf32>, vector<8x128xf32> -> vector<8x128xf32>
    %149 = arith.addf %147, %148 : vector<8x128xf32>
    %150 = arith.mulf %149, %8 : vector<8x128xf32>
    %151 = math.tanh %150 : vector<8x128xf32>
    %cst_50 = arith.constant 1.000000e+00 : f32
    %152 = vector.broadcast %cst_50 : f32 to vector<8x128xf32>
    %153 = arith.addf %152, %151 : vector<8x128xf32>
    %cst_51 = arith.constant 5.000000e-01 : f32
    %154 = vector.broadcast %cst_51 : f32 to vector<8x128xf32>
    %155 = arith.mulf %154, %153 : vector<8x128xf32>
    %156 = arith.select %5, %151, %155 : vector<8x128xi1>, vector<8x128xf32>
    %157 = vector.extract_strided_slice %156 {offsets = [0, 0], sizes = [8, 32], strides = [1, 1]} : vector<8x128xf32> to vector<8x32xf32>
    %158 = vector.extract_strided_slice %156 {offsets = [0, 32], sizes = [8, 32], strides = [1, 1]} : vector<8x128xf32> to vector<8x32xf32>
    %159 = vector.extract_strided_slice %156 {offsets = [0, 64], sizes = [8, 32], strides = [1, 1]} : vector<8x128xf32> to vector<8x32xf32>
    %160 = vector.extract_strided_slice %156 {offsets = [0, 96], sizes = [8, 32], strides = [1, 1]} : vector<8x128xf32> to vector<8x32xf32>
    %161 = arith.mulf %158, %139 : vector<8x32xf32>
    %162 = arith.mulf %157, %159 : vector<8x32xf32>
    %163 = arith.addf %161, %162 : vector<8x32xf32>
    %164 = math.tanh %163 : vector<8x32xf32>
    %165 = arith.mulf %160, %164 : vector<8x32xf32>
    %166 = arith.index_cast %145 : i32 to index
    %c0_52 = arith.constant 0 : index
    %167 = vector.load %arg12[%166, %c0_52] : memref<64x32xf32, #tpu.memory_space<vmem>>, vector<8x32xf32>
    tpu.vector_store %arg12[%166, %c0_52], %165 {strides = array<i32>} : memref<64x32xf32, #tpu.memory_space<vmem>>, vector<8x32xf32>,
    %c6_i32 = arith.constant 6 : i32
    %c8_i32_53 = arith.constant 8 : i32
    %168 = arith.muli %c6_i32, %c8_i32_53 : i32
    %169 = tpu.assume_multiple %168, 8 : i32
    %170 = arith.index_cast %169 : i32 to index
    %c0_54 = arith.constant 0 : index
    %171 = vector.load %arg11[%170, %c0_54] : memref<64x128xf32, #tpu.memory_space<vmem>>, vector<8x128xf32>
    %cst_55 = arith.constant dense<0.000000e+00> : vector<8x128xf32>
    %172 = tpu.matmul %165, %12, %cst_55 {dimension_numbers = #tpu.dot_dimension_numbers<[1], [0], [0], [1], [0, 0, 1, 1], [], []>} : vector<8x32xf32>, vector<32x128xf32>, vector<8x128xf32> -> vector<8x128xf32>
    %173 = arith.addf %171, %172 : vector<8x128xf32>
    %174 = arith.mulf %173, %8 : vector<8x128xf32>
    %175 = math.tanh %174 : vector<8x128xf32>
    %cst_56 = arith.constant 1.000000e+00 : f32
    %176 = vector.broadcast %cst_56 : f32 to vector<8x128xf32>
    %177 = arith.addf %176, %175 : vector<8x128xf32>
    %cst_57 = arith.constant 5.000000e-01 : f32
    %178 = vector.broadcast %cst_57 : f32 to vector<8x128xf32>
    %179 = arith.mulf %178, %177 : vector<8x128xf32>
    %180 = arith.select %5, %175, %179 : vector<8x128xi1>, vector<8x128xf32>
    %181 = vector.extract_strided_slice %180 {offsets = [0, 0], sizes = [8, 32], strides = [1, 1]} : vector<8x128xf32> to vector<8x32xf32>
    %182 = vector.extract_strided_slice %180 {offsets = [0, 32], sizes = [8, 32], strides = [1, 1]} : vector<8x128xf32> to vector<8x32xf32>
    %183 = vector.extract_strided_slice %180 {offsets = [0, 64], sizes = [8, 32], strides = [1, 1]} : vector<8x128xf32> to vector<8x32xf32>
    %184 = vector.extract_strided_slice %180 {offsets = [0, 96], sizes = [8, 32], strides = [1, 1]} : vector<8x128xf32> to vector<8x32xf32>
    %185 = arith.mulf %182, %163 : vector<8x32xf32>
    %186 = arith.mulf %181, %183 : vector<8x32xf32>
    %187 = arith.addf %185, %186 : vector<8x32xf32>
    %188 = math.tanh %187 : vector<8x32xf32>
    %189 = arith.mulf %184, %188 : vector<8x32xf32>
    %190 = arith.index_cast %169 : i32 to index
    %c0_58 = arith.constant 0 : index
    %191 = vector.load %arg12[%190, %c0_58] : memref<64x32xf32, #tpu.memory_space<vmem>>, vector<8x32xf32>
    tpu.vector_store %arg12[%190, %c0_58], %189 {strides = array<i32>} : memref<64x32xf32, #tpu.memory_space<vmem>>, vector<8x32xf32>,
    %c7_i32 = arith.constant 7 : i32
    %c8_i32_59 = arith.constant 8 : i32
    %192 = arith.muli %c7_i32, %c8_i32_59 : i32
    %193 = tpu.assume_multiple %192, 8 : i32
    %194 = arith.index_cast %193 : i32 to index
    %c0_60 = arith.constant 0 : index
    %195 = vector.load %arg11[%194, %c0_60] : memref<64x128xf32, #tpu.memory_space<vmem>>, vector<8x128xf32>
    %cst_61 = arith.constant dense<0.000000e+00> : vector<8x128xf32>
    %196 = tpu.matmul %189, %12, %cst_61 {dimension_numbers = #tpu.dot_dimension_numbers<[1], [0], [0], [1], [0, 0, 1, 1], [], []>} : vector<8x32xf32>, vector<32x128xf32>, vector<8x128xf32> -> vector<8x128xf32>
    %197 = arith.addf %195, %196 : vector<8x128xf32>
    %198 = arith.mulf %197, %8 : vector<8x128xf32>
    %199 = math.tanh %198 : vector<8x128xf32>
    %cst_62 = arith.constant 1.000000e+00 : f32
    %200 = vector.broadcast %cst_62 : f32 to vector<8x128xf32>
    %201 = arith.addf %200, %199 : vector<8x128xf32>
    %cst_63 = arith.constant 5.000000e-01 : f32
    %202 = vector.broadcast %cst_63 : f32 to vector<8x128xf32>
    %203 = arith.mulf %202, %201 : vector<8x128xf32>
    %204 = arith.select %5, %199, %203 : vector<8x128xi1>, vector<8x128xf32>
    %205 = vector.extract_strided_slice %204 {offsets = [0, 0], sizes = [8, 32], strides = [1, 1]} : vector<8x128xf32> to vector<8x32xf32>
    %206 = vector.extract_strided_slice %204 {offsets = [0, 32], sizes = [8, 32], strides = [1, 1]} : vector<8x128xf32> to vector<8x32xf32>
    %207 = vector.extract_strided_slice %204 {offsets = [0, 64], sizes = [8, 32], strides = [1, 1]} : vector<8x128xf32> to vector<8x32xf32>
    %208 = vector.extract_strided_slice %204 {offsets = [0, 96], sizes = [8, 32], strides = [1, 1]} : vector<8x128xf32> to vector<8x32xf32>
    %209 = arith.mulf %206, %187 : vector<8x32xf32>
    %210 = arith.mulf %205, %207 : vector<8x32xf32>
    %211 = arith.addf %209, %210 : vector<8x32xf32>
    %212 = math.tanh %211 : vector<8x32xf32>
    %213 = arith.mulf %208, %212 : vector<8x32xf32>
    %214 = arith.index_cast %193 : i32 to index
    %c0_64 = arith.constant 0 : index
    %215 = vector.load %arg12[%214, %c0_64] : memref<64x32xf32, #tpu.memory_space<vmem>>, vector<8x32xf32>
    tpu.vector_store %arg12[%214, %c0_64], %213 {strides = array<i32>} : memref<64x32xf32, #tpu.memory_space<vmem>>, vector<8x32xf32>,
    %c8_i32_65 = arith.constant 8 : i32
    %c0_66 = arith.constant 0 : index
    %c0_67 = arith.constant 0 : index
    %c0_68 = arith.constant 0 : index
    %216 = vector.load %arg4[%c0_66, %c0_67, %c0_68] : memref<1x32x128xf32, #tpu.memory_space<vmem>>, vector<1x32x128xf32>
    %217 = vector.shape_cast %216 : vector<1x32x128xf32> to vector<32x128xf32>
    %c0_69 = arith.constant 0 : index
    %c0_70 = arith.constant 0 : index
    %c0_71 = arith.constant 0 : index
    %218 = vector.load %arg5[%c0_69, %c0_70, %c0_71] : memref<1x1x128xf32, #tpu.memory_space<vmem>>, vector<1x1x128xf32>
    %219 = vector.shape_cast %218 : vector<1x1x128xf32> to vector<1x128xf32>
    %c1 = arith.constant 1 : index
    %c0_72 = arith.constant 0 : index
    %c0_73 = arith.constant 0 : index
    %220 = vector.load %arg6[%c1, %c0_72, %c0_73] : memref<2x32x128xf32, #tpu.memory_space<vmem>>, vector<1x32x128xf32>
    %221 = vector.shape_cast %220 : vector<1x32x128xf32> to vector<32x128xf32>
    %c1_74 = arith.constant 1 : index
    %c0_75 = arith.constant 0 : index
    %c0_76 = arith.constant 0 : index
    %222 = vector.load %arg7[%c1_74, %c0_75, %c0_76] : memref<2x1x128xf32, #tpu.memory_space<vmem>>, vector<1x1x128xf32>
    %223 = vector.shape_cast %222 : vector<1x1x128xf32> to vector<1x128xf32>
    %224 = arith.addf %219, %223 : vector<1x128xf32>
    %c0_77 = arith.constant 0 : index
    %c0_78 = arith.constant 0 : index
    %225 = vector.load %arg12[%c0_77, %c0_78] : memref<64x32xf32, #tpu.memory_space<vmem>>, vector<64x32xf32>
    %cst_79 = arith.constant dense<0.000000e+00> : vector<64x128xf32>
    %226 = tpu.matmul %225, %217, %cst_79 {dimension_numbers = #tpu.dot_dimension_numbers<[1], [0], [0], [1], [0, 0, 1, 1], [], []>} : vector<64x32xf32>, vector<32x128xf32>, vector<64x128xf32> -> vector<64x128xf32>
    %227 = vector.broadcast %224 : vector<1x128xf32> to vector<64x128xf32>
    %228 = arith.addf %226, %227 : vector<64x128xf32>
    %c0_80 = arith.constant 0 : index
    %c0_81 = arith.constant 0 : index
    %229 = vector.load %arg11[%c0_80, %c0_81] : memref<64x128xf32, #tpu.memory_space<vmem>>, vector<64x128xf32>
    tpu.vector_store %arg11[%c0_80, %c0_81], %228 {strides = array<i32>} : memref<64x128xf32, #tpu.memory_space<vmem>>, vector<64x128xf32>,
    %cst_82 = arith.constant 0.000000e+00 : f32
    %230 = vector.broadcast %cst_82 : f32 to vector<8x32xf32>
    %cst_83 = arith.constant 0.000000e+00 : f32
    %231 = vector.broadcast %cst_83 : f32 to vector<8x32xf32>
    %c0_i32_84 = arith.constant 0 : i32
    %c8_i32_85 = arith.constant 8 : i32
    %232 = arith.muli %c0_i32_84, %c8_i32_85 : i32
    %233 = tpu.assume_multiple %232, 8 : i32
    %234 = arith.index_cast %233 : i32 to index
    %c0_86 = arith.constant 0 : index
    %235 = vector.load %arg11[%234, %c0_86] : memref<64x128xf32, #tpu.memory_space<vmem>>, vector<8x128xf32>
    %cst_87 = arith.constant dense<0.000000e+00> : vector<8x128xf32>
    %236 = tpu.matmul %230, %221, %cst_87 {dimension_numbers = #tpu.dot_dimension_numbers<[1], [0], [0], [1], [0, 0, 1, 1], [], []>} : vector<8x32xf32>, vector<32x128xf32>, vector<8x128xf32> -> vector<8x128xf32>
    %237 = arith.addf %235, %236 : vector<8x128xf32>
    %238 = arith.mulf %237, %8 : vector<8x128xf32>
    %239 = math.tanh %238 : vector<8x128xf32>
    %cst_88 = arith.constant 1.000000e+00 : f32
    %240 = vector.broadcast %cst_88 : f32 to vector<8x128xf32>
    %241 = arith.addf %240, %239 : vector<8x128xf32>
    %cst_89 = arith.constant 5.000000e-01 : f32
    %242 = vector.broadcast %cst_89 : f32 to vector<8x128xf32>
    %243 = arith.mulf %242, %241 : vector<8x128xf32>
    %244 = arith.select %5, %239, %243 : vector<8x128xi1>, vector<8x128xf32>
    %245 = vector.extract_strided_slice %244 {offsets = [0, 0], sizes = [8, 32], strides = [1, 1]} : vector<8x128xf32> to vector<8x32xf32>
    %246 = vector.extract_strided_slice %244 {offsets = [0, 32], sizes = [8, 32], strides = [1, 1]} : vector<8x128xf32> to vector<8x32xf32>
    %247 = vector.extract_strided_slice %244 {offsets = [0, 64], sizes = [8, 32], strides = [1, 1]} : vector<8x128xf32> to vector<8x32xf32>
    %248 = vector.extract_strided_slice %244 {offsets = [0, 96], sizes = [8, 32], strides = [1, 1]} : vector<8x128xf32> to vector<8x32xf32>
    %249 = arith.mulf %246, %231 : vector<8x32xf32>
    %250 = arith.mulf %245, %247 : vector<8x32xf32>
    %251 = arith.addf %249, %250 : vector<8x32xf32>
    %252 = math.tanh %251 : vector<8x32xf32>
    %253 = arith.mulf %248, %252 : vector<8x32xf32>
    %c1_i32_90 = arith.constant 1 : i32
    %c8_i32_91 = arith.constant 8 : i32
    %254 = arith.muli %c1_i32_90, %c8_i32_91 : i32
    %255 = tpu.assume_multiple %254, 8 : i32
    %256 = arith.index_cast %255 : i32 to index
    %c0_92 = arith.constant 0 : index
    %257 = vector.load %arg11[%256, %c0_92] : memref<64x128xf32, #tpu.memory_space<vmem>>, vector<8x128xf32>
    %cst_93 = arith.constant dense<0.000000e+00> : vector<8x128xf32>
    %258 = tpu.matmul %253, %221, %cst_93 {dimension_numbers = #tpu.dot_dimension_numbers<[1], [0], [0], [1], [0, 0, 1, 1], [], []>} : vector<8x32xf32>, vector<32x128xf32>, vector<8x128xf32> -> vector<8x128xf32>
    %259 = arith.addf %257, %258 : vector<8x128xf32>
    %260 = arith.mulf %259, %8 : vector<8x128xf32>
    %261 = math.tanh %260 : vector<8x128xf32>
    %cst_94 = arith.constant 1.000000e+00 : f32
    %262 = vector.broadcast %cst_94 : f32 to vector<8x128xf32>
    %263 = arith.addf %262, %261 : vector<8x128xf32>
    %cst_95 = arith.constant 5.000000e-01 : f32
    %264 = vector.broadcast %cst_95 : f32 to vector<8x128xf32>
    %265 = arith.mulf %264, %263 : vector<8x128xf32>
    %266 = arith.select %5, %261, %265 : vector<8x128xi1>, vector<8x128xf32>
    %267 = vector.extract_strided_slice %266 {offsets = [0, 0], sizes = [8, 32], strides = [1, 1]} : vector<8x128xf32> to vector<8x32xf32>
    %268 = vector.extract_strided_slice %266 {offsets = [0, 32], sizes = [8, 32], strides = [1, 1]} : vector<8x128xf32> to vector<8x32xf32>
    %269 = vector.extract_strided_slice %266 {offsets = [0, 64], sizes = [8, 32], strides = [1, 1]} : vector<8x128xf32> to vector<8x32xf32>
    %270 = vector.extract_strided_slice %266 {offsets = [0, 96], sizes = [8, 32], strides = [1, 1]} : vector<8x128xf32> to vector<8x32xf32>
    %271 = arith.mulf %268, %251 : vector<8x32xf32>
    %272 = arith.mulf %267, %269 : vector<8x32xf32>
    %273 = arith.addf %271, %272 : vector<8x32xf32>
    %274 = math.tanh %273 : vector<8x32xf32>
    %275 = arith.mulf %270, %274 : vector<8x32xf32>
    %c2_i32_96 = arith.constant 2 : i32
    %c8_i32_97 = arith.constant 8 : i32
    %276 = arith.muli %c2_i32_96, %c8_i32_97 : i32
    %277 = tpu.assume_multiple %276, 8 : i32
    %278 = arith.index_cast %277 : i32 to index
    %c0_98 = arith.constant 0 : index
    %279 = vector.load %arg11[%278, %c0_98] : memref<64x128xf32, #tpu.memory_space<vmem>>, vector<8x128xf32>
    %cst_99 = arith.constant dense<0.000000e+00> : vector<8x128xf32>
    %280 = tpu.matmul %275, %221, %cst_99 {dimension_numbers = #tpu.dot_dimension_numbers<[1], [0], [0], [1], [0, 0, 1, 1], [], []>} : vector<8x32xf32>, vector<32x128xf32>, vector<8x128xf32> -> vector<8x128xf32>
    %281 = arith.addf %279, %280 : vector<8x128xf32>
    %282 = arith.mulf %281, %8 : vector<8x128xf32>
    %283 = math.tanh %282 : vector<8x128xf32>
    %cst_100 = arith.constant 1.000000e+00 : f32
    %284 = vector.broadcast %cst_100 : f32 to vector<8x128xf32>
    %285 = arith.addf %284, %283 : vector<8x128xf32>
    %cst_101 = arith.constant 5.000000e-01 : f32
    %286 = vector.broadcast %cst_101 : f32 to vector<8x128xf32>
    %287 = arith.mulf %286, %285 : vector<8x128xf32>
    %288 = arith.select %5, %283, %287 : vector<8x128xi1>, vector<8x128xf32>
    %289 = vector.extract_strided_slice %288 {offsets = [0, 0], sizes = [8, 32], strides = [1, 1]} : vector<8x128xf32> to vector<8x32xf32>
    %290 = vector.extract_strided_slice %288 {offsets = [0, 32], sizes = [8, 32], strides = [1, 1]} : vector<8x128xf32> to vector<8x32xf32>
    %291 = vector.extract_strided_slice %288 {offsets = [0, 64], sizes = [8, 32], strides = [1, 1]} : vector<8x128xf32> to vector<8x32xf32>
    %292 = vector.extract_strided_slice %288 {offsets = [0, 96], sizes = [8, 32], strides = [1, 1]} : vector<8x128xf32> to vector<8x32xf32>
    %293 = arith.mulf %290, %273 : vector<8x32xf32>
    %294 = arith.mulf %289, %291 : vector<8x32xf32>
    %295 = arith.addf %293, %294 : vector<8x32xf32>
    %296 = math.tanh %295 : vector<8x32xf32>
    %297 = arith.mulf %292, %296 : vector<8x32xf32>
    %c3_i32_102 = arith.constant 3 : i32
    %c8_i32_103 = arith.constant 8 : i32
    %298 = arith.muli %c3_i32_102, %c8_i32_103 : i32
    %299 = tpu.assume_multiple %298, 8 : i32
    %300 = arith.index_cast %299 : i32 to index
    %c0_104 = arith.constant 0 : index
    %301 = vector.load %arg11[%300, %c0_104] : memref<64x128xf32, #tpu.memory_space<vmem>>, vector<8x128xf32>
    %cst_105 = arith.constant dense<0.000000e+00> : vector<8x128xf32>
    %302 = tpu.matmul %297, %221, %cst_105 {dimension_numbers = #tpu.dot_dimension_numbers<[1], [0], [0], [1], [0, 0, 1, 1], [], []>} : vector<8x32xf32>, vector<32x128xf32>, vector<8x128xf32> -> vector<8x128xf32>
    %303 = arith.addf %301, %302 : vector<8x128xf32>
    %304 = arith.mulf %303, %8 : vector<8x128xf32>
    %305 = math.tanh %304 : vector<8x128xf32>
    %cst_106 = arith.constant 1.000000e+00 : f32
    %306 = vector.broadcast %cst_106 : f32 to vector<8x128xf32>
    %307 = arith.addf %306, %305 : vector<8x128xf32>
    %cst_107 = arith.constant 5.000000e-01 : f32
    %308 = vector.broadcast %cst_107 : f32 to vector<8x128xf32>
    %309 = arith.mulf %308, %307 : vector<8x128xf32>
    %310 = arith.select %5, %305, %309 : vector<8x128xi1>, vector<8x128xf32>
    %311 = vector.extract_strided_slice %310 {offsets = [0, 0], sizes = [8, 32], strides = [1, 1]} : vector<8x128xf32> to vector<8x32xf32>
    %312 = vector.extract_strided_slice %310 {offsets = [0, 32], sizes = [8, 32], strides = [1, 1]} : vector<8x128xf32> to vector<8x32xf32>
    %313 = vector.extract_strided_slice %310 {offsets = [0, 64], sizes = [8, 32], strides = [1, 1]} : vector<8x128xf32> to vector<8x32xf32>
    %314 = vector.extract_strided_slice %310 {offsets = [0, 96], sizes = [8, 32], strides = [1, 1]} : vector<8x128xf32> to vector<8x32xf32>
    %315 = arith.mulf %312, %295 : vector<8x32xf32>
    %316 = arith.mulf %311, %313 : vector<8x32xf32>
    %317 = arith.addf %315, %316 : vector<8x32xf32>
    %318 = math.tanh %317 : vector<8x32xf32>
    %319 = arith.mulf %314, %318 : vector<8x32xf32>
    %c4_i32_108 = arith.constant 4 : i32
    %c8_i32_109 = arith.constant 8 : i32
    %320 = arith.muli %c4_i32_108, %c8_i32_109 : i32
    %321 = tpu.assume_multiple %320, 8 : i32
    %322 = arith.index_cast %321 : i32 to index
    %c0_110 = arith.constant 0 : index
    %323 = vector.load %arg11[%322, %c0_110] : memref<64x128xf32, #tpu.memory_space<vmem>>, vector<8x128xf32>
    %cst_111 = arith.constant dense<0.000000e+00> : vector<8x128xf32>
    %324 = tpu.matmul %319, %221, %cst_111 {dimension_numbers = #tpu.dot_dimension_numbers<[1], [0], [0], [1], [0, 0, 1, 1], [], []>} : vector<8x32xf32>, vector<32x128xf32>, vector<8x128xf32> -> vector<8x128xf32>
    %325 = arith.addf %323, %324 : vector<8x128xf32>
    %326 = arith.mulf %325, %8 : vector<8x128xf32>
    %327 = math.tanh %326 : vector<8x128xf32>
    %cst_112 = arith.constant 1.000000e+00 : f32
    %328 = vector.broadcast %cst_112 : f32 to vector<8x128xf32>
    %329 = arith.addf %328, %327 : vector<8x128xf32>
    %cst_113 = arith.constant 5.000000e-01 : f32
    %330 = vector.broadcast %cst_113 : f32 to vector<8x128xf32>
    %331 = arith.mulf %330, %329 : vector<8x128xf32>
    %332 = arith.select %5, %327, %331 : vector<8x128xi1>, vector<8x128xf32>
    %333 = vector.extract_strided_slice %332 {offsets = [0, 0], sizes = [8, 32], strides = [1, 1]} : vector<8x128xf32> to vector<8x32xf32>
    %334 = vector.extract_strided_slice %332 {offsets = [0, 32], sizes = [8, 32], strides = [1, 1]} : vector<8x128xf32> to vector<8x32xf32>
    %335 = vector.extract_strided_slice %332 {offsets = [0, 64], sizes = [8, 32], strides = [1, 1]} : vector<8x128xf32> to vector<8x32xf32>
    %336 = vector.extract_strided_slice %332 {offsets = [0, 96], sizes = [8, 32], strides = [1, 1]} : vector<8x128xf32> to vector<8x32xf32>
    %337 = arith.mulf %334, %317 : vector<8x32xf32>
    %338 = arith.mulf %333, %335 : vector<8x32xf32>
    %339 = arith.addf %337, %338 : vector<8x32xf32>
    %340 = math.tanh %339 : vector<8x32xf32>
    %341 = arith.mulf %336, %340 : vector<8x32xf32>
    %c5_i32_114 = arith.constant 5 : i32
    %c8_i32_115 = arith.constant 8 : i32
    %342 = arith.muli %c5_i32_114, %c8_i32_115 : i32
    %343 = tpu.assume_multiple %342, 8 : i32
    %344 = arith.index_cast %343 : i32 to index
    %c0_116 = arith.constant 0 : index
    %345 = vector.load %arg11[%344, %c0_116] : memref<64x128xf32, #tpu.memory_space<vmem>>, vector<8x128xf32>
    %cst_117 = arith.constant dense<0.000000e+00> : vector<8x128xf32>
    %346 = tpu.matmul %341, %221, %cst_117 {dimension_numbers = #tpu.dot_dimension_numbers<[1], [0], [0], [1], [0, 0, 1, 1], [], []>} : vector<8x32xf32>, vector<32x128xf32>, vector<8x128xf32> -> vector<8x128xf32>
    %347 = arith.addf %345, %346 : vector<8x128xf32>
    %348 = arith.mulf %347, %8 : vector<8x128xf32>
    %349 = math.tanh %348 : vector<8x128xf32>
    %cst_118 = arith.constant 1.000000e+00 : f32
    %350 = vector.broadcast %cst_118 : f32 to vector<8x128xf32>
    %351 = arith.addf %350, %349 : vector<8x128xf32>
    %cst_119 = arith.constant 5.000000e-01 : f32
    %352 = vector.broadcast %cst_119 : f32 to vector<8x128xf32>
    %353 = arith.mulf %352, %351 : vector<8x128xf32>
    %354 = arith.select %5, %349, %353 : vector<8x128xi1>, vector<8x128xf32>
    %355 = vector.extract_strided_slice %354 {offsets = [0, 0], sizes = [8, 32], strides = [1, 1]} : vector<8x128xf32> to vector<8x32xf32>
    %356 = vector.extract_strided_slice %354 {offsets = [0, 32], sizes = [8, 32], strides = [1, 1]} : vector<8x128xf32> to vector<8x32xf32>
    %357 = vector.extract_strided_slice %354 {offsets = [0, 64], sizes = [8, 32], strides = [1, 1]} : vector<8x128xf32> to vector<8x32xf32>
    %358 = vector.extract_strided_slice %354 {offsets = [0, 96], sizes = [8, 32], strides = [1, 1]} : vector<8x128xf32> to vector<8x32xf32>
    %359 = arith.mulf %356, %339 : vector<8x32xf32>
    %360 = arith.mulf %355, %357 : vector<8x32xf32>
    %361 = arith.addf %359, %360 : vector<8x32xf32>
    %362 = math.tanh %361 : vector<8x32xf32>
    %363 = arith.mulf %358, %362 : vector<8x32xf32>
    %c6_i32_120 = arith.constant 6 : i32
    %c8_i32_121 = arith.constant 8 : i32
    %364 = arith.muli %c6_i32_120, %c8_i32_121 : i32
    %365 = tpu.assume_multiple %364, 8 : i32
    %366 = arith.index_cast %365 : i32 to index
    %c0_122 = arith.constant 0 : index
    %367 = vector.load %arg11[%366, %c0_122] : memref<64x128xf32, #tpu.memory_space<vmem>>, vector<8x128xf32>
    %cst_123 = arith.constant dense<0.000000e+00> : vector<8x128xf32>
    %368 = tpu.matmul %363, %221, %cst_123 {dimension_numbers = #tpu.dot_dimension_numbers<[1], [0], [0], [1], [0, 0, 1, 1], [], []>} : vector<8x32xf32>, vector<32x128xf32>, vector<8x128xf32> -> vector<8x128xf32>
    %369 = arith.addf %367, %368 : vector<8x128xf32>
    %370 = arith.mulf %369, %8 : vector<8x128xf32>
    %371 = math.tanh %370 : vector<8x128xf32>
    %cst_124 = arith.constant 1.000000e+00 : f32
    %372 = vector.broadcast %cst_124 : f32 to vector<8x128xf32>
    %373 = arith.addf %372, %371 : vector<8x128xf32>
    %cst_125 = arith.constant 5.000000e-01 : f32
    %374 = vector.broadcast %cst_125 : f32 to vector<8x128xf32>
    %375 = arith.mulf %374, %373 : vector<8x128xf32>
    %376 = arith.select %5, %371, %375 : vector<8x128xi1>, vector<8x128xf32>
    %377 = vector.extract_strided_slice %376 {offsets = [0, 0], sizes = [8, 32], strides = [1, 1]} : vector<8x128xf32> to vector<8x32xf32>
    %378 = vector.extract_strided_slice %376 {offsets = [0, 32], sizes = [8, 32], strides = [1, 1]} : vector<8x128xf32> to vector<8x32xf32>
    %379 = vector.extract_strided_slice %376 {offsets = [0, 64], sizes = [8, 32], strides = [1, 1]} : vector<8x128xf32> to vector<8x32xf32>
    %380 = vector.extract_strided_slice %376 {offsets = [0, 96], sizes = [8, 32], strides = [1, 1]} : vector<8x128xf32> to vector<8x32xf32>
    %381 = arith.mulf %378, %361 : vector<8x32xf32>
    %382 = arith.mulf %377, %379 : vector<8x32xf32>
    %383 = arith.addf %381, %382 : vector<8x32xf32>
    %384 = math.tanh %383 : vector<8x32xf32>
    %385 = arith.mulf %380, %384 : vector<8x32xf32>
    %c7_i32_126 = arith.constant 7 : i32
    %c8_i32_127 = arith.constant 8 : i32
    %386 = arith.muli %c7_i32_126, %c8_i32_127 : i32
    %387 = tpu.assume_multiple %386, 8 : i32
    %388 = arith.index_cast %387 : i32 to index
    %c0_128 = arith.constant 0 : index
    %389 = vector.load %arg11[%388, %c0_128] : memref<64x128xf32, #tpu.memory_space<vmem>>, vector<8x128xf32>
    %cst_129 = arith.constant dense<0.000000e+00> : vector<8x128xf32>
    %390 = tpu.matmul %385, %221, %cst_129 {dimension_numbers = #tpu.dot_dimension_numbers<[1], [0], [0], [1], [0, 0, 1, 1], [], []>} : vector<8x32xf32>, vector<32x128xf32>, vector<8x128xf32> -> vector<8x128xf32>
    %391 = arith.addf %389, %390 : vector<8x128xf32>
    %392 = arith.mulf %391, %8 : vector<8x128xf32>
    %393 = math.tanh %392 : vector<8x128xf32>
    %cst_130 = arith.constant 1.000000e+00 : f32
    %394 = vector.broadcast %cst_130 : f32 to vector<8x128xf32>
    %395 = arith.addf %394, %393 : vector<8x128xf32>
    %cst_131 = arith.constant 5.000000e-01 : f32
    %396 = vector.broadcast %cst_131 : f32 to vector<8x128xf32>
    %397 = arith.mulf %396, %395 : vector<8x128xf32>
    %398 = arith.select %5, %393, %397 : vector<8x128xi1>, vector<8x128xf32>
    %399 = vector.extract_strided_slice %398 {offsets = [0, 0], sizes = [8, 32], strides = [1, 1]} : vector<8x128xf32> to vector<8x32xf32>
    %400 = vector.extract_strided_slice %398 {offsets = [0, 32], sizes = [8, 32], strides = [1, 1]} : vector<8x128xf32> to vector<8x32xf32>
    %401 = vector.extract_strided_slice %398 {offsets = [0, 64], sizes = [8, 32], strides = [1, 1]} : vector<8x128xf32> to vector<8x32xf32>
    %402 = vector.extract_strided_slice %398 {offsets = [0, 96], sizes = [8, 32], strides = [1, 1]} : vector<8x128xf32> to vector<8x32xf32>
    %403 = arith.mulf %400, %383 : vector<8x32xf32>
    %404 = arith.mulf %399, %401 : vector<8x32xf32>
    %405 = arith.addf %403, %404 : vector<8x32xf32>
    %406 = math.tanh %405 : vector<8x32xf32>
    %407 = arith.mulf %402, %406 : vector<8x32xf32>
    %c8_i32_132 = arith.constant 8 : i32
    %c0_133 = arith.constant 0 : index
    %c0_134 = arith.constant 0 : index
    %408 = vector.load %arg8[%c0_133, %c0_134] : memref<32x5xf32, #tpu.memory_space<vmem>>, vector<32x5xf32>
    %cst_135 = arith.constant dense<0.000000e+00> : vector<8x5xf32>
    %409 = tpu.matmul %407, %408, %cst_135 {dimension_numbers = #tpu.dot_dimension_numbers<[1], [0], [0], [1], [0, 0, 1, 1], [], []>} : vector<8x32xf32>, vector<32x5xf32>, vector<8x5xf32> -> vector<8x5xf32>
    %c0_136 = arith.constant 0 : index
    %c0_137 = arith.constant 0 : index
    %410 = vector.load %arg9[%c0_136, %c0_137] : memref<1x5xf32, #tpu.memory_space<vmem>>, vector<1x5xf32>
    %411 = vector.broadcast %410 : vector<1x5xf32> to vector<8x5xf32>
    %412 = arith.addf %409, %411 : vector<8x5xf32>
    %c0_138 = arith.constant 0 : index
    %c0_139 = arith.constant 0 : index
    %413 = vector.load %arg10[%c0_138, %c0_139] : memref<8x5xf32, #tpu.memory_space<vmem>>, vector<8x5xf32>
    tpu.vector_store %arg10[%c0_138, %c0_139], %412 {strides = array<i32>} : memref<8x5xf32, #tpu.memory_space<vmem>>, vector<8x5xf32>,
    return
  }
  func.func @transform_0(%arg0: i32) -> (i32, i32, i32) {
    %c0_i32 = arith.constant 0 : i32
    %c0_i32_0 = arith.constant 0 : i32
    %c0_i32_1 = arith.constant 0 : i32
    return %c0_i32, %arg0, %c0_i32_0 : i32, i32, i32
  }
  func.func @transform_1(%arg0: i32) -> (i32, i32) {
    %c0_i32 = arith.constant 0 : i32
    %c0_i32_0 = arith.constant 0 : i32
    %c0_i32_1 = arith.constant 0 : i32
    return %c0_i32, %c0_i32_0 : i32, i32
  }
  func.func @transform_2(%arg0: i32) -> (i32, i32) {
    %c0_i32 = arith.constant 0 : i32
    %c0_i32_0 = arith.constant 0 : i32
    %c0_i32_1 = arith.constant 0 : i32
    return %c0_i32, %c0_i32_0 : i32, i32
  }
  func.func @transform_3(%arg0: i32) -> (i32, i32, i32) {
    %c0_i32 = arith.constant 0 : i32
    %c0_i32_0 = arith.constant 0 : i32
    %c0_i32_1 = arith.constant 0 : i32
    %c0_i32_2 = arith.constant 0 : i32
    return %c0_i32, %c0_i32_0, %c0_i32_1 : i32, i32, i32
  }
  func.func @transform_4(%arg0: i32) -> (i32, i32, i32) {
    %c0_i32 = arith.constant 0 : i32
    %c0_i32_0 = arith.constant 0 : i32
    %c0_i32_1 = arith.constant 0 : i32
    %c0_i32_2 = arith.constant 0 : i32
    return %c0_i32, %c0_i32_0, %c0_i32_1 : i32, i32, i32
  }
  func.func @transform_5(%arg0: i32) -> (i32, i32, i32) {
    %c0_i32 = arith.constant 0 : i32
    %c0_i32_0 = arith.constant 0 : i32
    %c0_i32_1 = arith.constant 0 : i32
    %c0_i32_2 = arith.constant 0 : i32
    return %c0_i32, %c0_i32_0, %c0_i32_1 : i32, i32, i32
  }
  func.func @transform_6(%arg0: i32) -> (i32, i32, i32) {
    %c0_i32 = arith.constant 0 : i32
    %c0_i32_0 = arith.constant 0 : i32
    %c0_i32_1 = arith.constant 0 : i32
    %c0_i32_2 = arith.constant 0 : i32
    return %c0_i32, %c0_i32_0, %c0_i32_1 : i32, i32, i32
  }
  func.func @transform_7(%arg0: i32) -> (i32, i32) {
    %c0_i32 = arith.constant 0 : i32
    %c0_i32_0 = arith.constant 0 : i32
    %c0_i32_1 = arith.constant 0 : i32
    return %c0_i32, %c0_i32_0 : i32, i32
  }
  func.func @transform_8(%arg0: i32) -> (i32, i32) {
    %c0_i32 = arith.constant 0 : i32
    %c0_i32_0 = arith.constant 0 : i32
    %c0_i32_1 = arith.constant 0 : i32
    return %c0_i32, %c0_i32_0 : i32, i32
  }
  func.func @transform_9(%arg0: i32) -> (i32, i32) {
    %c0_i32 = arith.constant 0 : i32
    %c0_i32_0 = arith.constant 0 : i32
    return %arg0, %c0_i32 : i32, i32
  }
}

</mosaic_0001>

<bundles_post_ra>
// kernel: tpu_custom_call.1
= control target key start
LH: loop header
LB: loop body
LE: loop exit
PB: predicated region body
PF: predicated region fallthrough
CT: control target
= control target key end

     0   :  { %14 = vsyncpa [#allocation5], 0  ;;  %s3560_s0 = inlined_call_operand.hbm [shape: f32[8,8,32], index: 0, kind: input, shape index: {}]   ;;  %s3561_s1 = inlined_call_operand.hbm [shape: f32[32,128], index: 1, kind: input, shape index: {}]   ;;  %s3562_s2 = inlined_call_operand.hbm [shape: f32[1,128], index: 2, kind: input, shape index: {}]   ;;  %s3563_s3 = inlined_call_operand.hbm [shape: f32[1,32,128], index: 3, kind: input, shape index: {}]   ;;  %s3564_s4 = inlined_call_operand.hbm [shape: f32[1,1,128], index: 4, kind: input, shape index: {}]   ;;  %s3565_s5 = inlined_call_operand.hbm [shape: f32[2,32,128], index: 5, kind: input, shape index: {}]   ;;  %s3566_s6 = inlined_call_operand.hbm [shape: f32[2,1,128], index: 6, kind: input, shape index: {}]   ;;  %s3567_s7 = inlined_call_operand.hbm [shape: f32[32,5], index: 7, kind: input, shape index: {}]   ;;  %s3568_s8 = inlined_call_operand.hbm [shape: f32[1,5], index: 8, kind: input, shape index: {}]   ;;  %s3569_s9 = inlined_call_operand.hbm [shape: f32[8,5], index: 9, kind: output, shape index: {}]  }
   0x1   :  { %15 = vsyncpa [#allocation8], 0 }
   0x2   :  { %16 = vsyncpa [#allocation11], 0 }
   0x3   :  { %17 = vsyncpa [#allocation14], 0 }
   0x4   :  { %18 = vsyncpa [#allocation17], 0 }
   0x5   :  { %19 = vsyncpa [#allocation6], 0  ;;  %s3001_s30 = smov [#allocation7]   ;;  %s3002_s11 = smov [#allocation10]  }
   0x6   :  { %s37_s10 = sshll.u32 %s3001_s30, 4  ;;  %s59_s12 = sshll.u32 %s3002_s11, 4  ;;  %s38_s10 = int_to_ptr.vmem [resolvable:$true] %s37_s10  ;;  %s3071_s12 = int_to_ptr.vmem [resolvable:$true] %s59_s12 }
   0x7   :  { %s2769_s15 = scalar_lea.hbm %s3561_s1, 512 }
   0x8   :  { %p2770_p0 = scmp.ne.s32.totalorder %s3561_s1, %s2769_s15  ;;  %p2773_p1 = scmp.lt.u32.totalorder %s2769_s15, %s3561_s1 }
   0xa   :  { %p2775_p2 = pnand %p2773_p1, %p2770_p0 }
   0xc   :  { %2778 = shalt.err (!%p2775_p2)
}
   0xd   :  { %s2779_s20 = scalar_lea.vmem %s38_s10, 512  ;;  %p2784_p4 = scmp.lt.s32.totalorder %s38_s10, %s38_s10 }
   0xe   :  { %p2780_p3 = scmp.ne.s32.totalorder %s38_s10, %s2779_s20  ;;  %p2785_p5 = scmp.lt.s32.totalorder %s2779_s20, %s2779_s20 }
  0x10   :  { %p2786_p6 = por %p2785_p5, %p2784_p4 }
  0x12   :  { %p2787_p7 = pnand %p2786_p6, %p2780_p3 }
  0x14   :  { %2790 = shalt.err (!%p2787_p7)
}
  0x15   :  { %s3003_s21 = smov 128   ;;  %s3004_s22 = smov 8  }
  0x16   :  { %43 = dma.hbm_to_vmem [thread:$0]  %s3561_s1, 512, %s38_s10, [#allocation8], %s3003_s21, %s3003_s21, %s3004_s22  }
  0x17   :  { %s2791_s27 = scalar_lea.hbm %s3563_s3, 512 }
  0x18   :  { %p2792_p8 = scmp.ne.s32.totalorder %s3563_s3, %s2791_s27  ;;  %p2795_p9 = scmp.lt.u32.totalorder %s2791_s27, %s3563_s3 }
  0x1a   :  { %p2797_p10 = pnand %p2795_p9, %p2792_p8 }
  0x1c   :  { %2800 = shalt.err (!%p2797_p10)
}
  0x1d   :  { %s2801_s13 = scalar_lea.vmem %s3071_s12, 512  ;;  %p2806_p12 = scmp.lt.s32.totalorder %s3071_s12, %s3071_s12 }
  0x1e   :  { %p2802_p11 = scmp.ne.s32.totalorder %s3071_s12, %s2801_s13  ;;  %p2807_p13 = scmp.lt.s32.totalorder %s2801_s13, %s2801_s13 }
  0x20   :  { %p2808_p0 = por %p2807_p13, %p2806_p12 }
  0x22   :  { %p2809_p1 = pnand %p2808_p0, %p2802_p11 }
  0x24   :  { %2812 = shalt.err (!%p2809_p1)
}
  0x25   :  { %65 = dma.hbm_to_vmem [thread:$0]  %s3563_s3, 512, %s3071_s12, [#allocation11], %s3003_s21, %s3003_s21, %s3004_s22  }
  0x26   :  { %s3005_s14 = smov [#allocation13]   ;;  %s3006_s16 = smov [#allocation16]  }
  0x27   :  { %s81_s15 = sshll.u32 %s3005_s14, 4  ;;  %s105_s17 = sshll.u32 %s3006_s16, 4  ;;  %s82_s15 = int_to_ptr.vmem [resolvable:$true] %s81_s15  ;;  %s3108_s17 = int_to_ptr.vmem [resolvable:$true] %s105_s17 }
  0x28   :  { %s2813_s20 = scalar_lea.hbm %s3565_s5, 1024 }
  0x29   :  { %p2814_p2 = scmp.ne.s32.totalorder %s3565_s5, %s2813_s20  ;;  %p2817_p3 = scmp.lt.u32.totalorder %s2813_s20, %s3565_s5 }
  0x2b   :  { %p2819_p4 = pnand %p2817_p3, %p2814_p2 }
  0x2d   :  { %2822 = shalt.err (!%p2819_p4)
}
  0x2e   :  { %s2823_s3 = scalar_lea.vmem %s82_s15, 1024  ;;  %p2828_p6 = scmp.lt.s32.totalorder %s82_s15, %s82_s15 }
  0x2f   :  { %p2824_p5 = scmp.ne.s32.totalorder %s82_s15, %s2823_s3  ;;  %p2829_p7 = scmp.lt.s32.totalorder %s2823_s3, %s2823_s3 }
  0x31   :  { %p2830_p8 = por %p2829_p7, %p2828_p6 }
  0x33   :  { %p2831_p9 = pnand %p2830_p8, %p2824_p5 }
  0x35   :  { %2834 = shalt.err (!%p2831_p9)
}
  0x36   :  { %87 = dma.hbm_to_vmem [thread:$0]  %s3565_s5, 1024, %s82_s15, [#allocation14], %s3003_s21, %s3003_s21, %s3004_s22  }
  0x37   :  { %s2835_s30 = scalar_lea.hbm %s3567_s7, 512 }
  0x38   :  { %p2836_p10 = scmp.ne.s32.totalorder %s3567_s7, %s2835_s30  ;;  %p2839_p11 = scmp.lt.u32.totalorder %s2835_s30, %s3567_s7 }
  0x3a   :  { %p2841_p12 = pnand %p2839_p11, %p2836_p10 }
  0x3c   :  { %2844 = shalt.err (!%p2841_p12)
}
  0x3d   :  { %s2845_s14 = scalar_lea.vmem %s3108_s17, 512  ;;  %p2850_p0 = scmp.lt.s32.totalorder %s3108_s17, %s3108_s17 }
  0x3e   :  { %p2846_p13 = scmp.ne.s32.totalorder %s3108_s17, %s2845_s14  ;;  %p2851_p1 = scmp.lt.s32.totalorder %s2845_s14, %s2845_s14 }
  0x40   :  { %p2852_p2 = por %p2851_p1, %p2850_p0 }
  0x42   :  { %p2853_p3 = pnand %p2852_p2, %p2846_p13 }
  0x44   :  { %2856 = shalt.err (!%p2853_p3)
}
  0x45   :  { %111 = dma.hbm_to_vmem [thread:$0]  %s3567_s7, 512, %s3108_s17, [#allocation17], %s3003_s21, %s3003_s21, %s3004_s22  }
  0x46   :  { %s3007_s16 = smov [#allocation4]   ;;  %s3008_s19 = smov [#allocation9]  }
  0x47   :  { %s25_s18 = sshll.u32 %s3007_s16, 4  ;;  %s50_s20 = sshll.u32 %s3008_s19, 4  ;;  %s26_s18 = int_to_ptr.vmem [resolvable:$true] %s25_s18  ;;  %s51_s20 = int_to_ptr.vmem [resolvable:$true] %s50_s20 }
  0x48   :  { %s2857_s25 = scalar_lea.hbm %s3560_s0, 1024 }
  0x49   :  { %p2858_p4 = scmp.ne.s32.totalorder %s3560_s0, %s2857_s25  ;;  %p2861_p5 = scmp.lt.u32.totalorder %s2857_s25, %s3560_s0 }
  0x4b   :  { %p2863_p6 = pnand %p2861_p5, %p2858_p4 }
  0x4d   :  { %2866 = shalt.err (!%p2863_p6)
}
  0x4e   :  { %s2867_s7 = scalar_lea.vmem %s26_s18, 1024  ;;  %p2872_p8 = scmp.lt.s32.totalorder %s26_s18, %s26_s18 }
  0x4f   :  { %p2868_p7 = scmp.ne.s32.totalorder %s26_s18, %s2867_s7  ;;  %p2873_p9 = scmp.lt.s32.totalorder %s2867_s7, %s2867_s7 }
  0x51   :  { %p2874_p10 = por %p2873_p9, %p2872_p8 }
  0x53   :  { %p2875_p11 = pnand %p2874_p10, %p2868_p7 }
  0x55   :  { %2878 = shalt.err (!%p2875_p11)
}
  0x56   :  { %31 = dma.hbm_to_vmem [thread:$0]  %s3560_s0, 1024, %s26_s18, [#allocation5], %s3003_s21, %s3003_s21, %s3004_s22  }
  0x57   :  { %s2879_s11 = scalar_lea.hbm %s3562_s2, 16 }
  0x58   :  { %p2880_p12 = scmp.ne.s32.totalorder %s3562_s2, %s2879_s11  ;;  %p2883_p13 = scmp.lt.u32.totalorder %s2879_s11, %s3562_s2 }
  0x5a   :  { %p2885_p0 = pnand %p2883_p13, %p2880_p12 }
  0x5c   :  { %2888 = shalt.err (!%p2885_p0)
}
  0x5d   :  { %s2889_s5 = scalar_lea.vmem %s51_s20, 16  ;;  %s2893_s15 = scalar_lea.vmem %s51_s20, 32 }
  0x5e   :  { %p2890_p1 = scmp.ne.s32.totalorder %s51_s20, %s2889_s5  ;;  %p2894_p2 = scmp.lt.s32.totalorder %s51_s20, %s51_s20 }
  0x5f   :  { %p2895_p3 = scmp.lt.s32.totalorder %s2893_s15, %s2889_s5 }
  0x61   :  { %p2896_p4 = por %p2895_p3, %p2894_p2 }
  0x63   :  { %p2897_p5 = pnand %p2896_p4, %p2890_p1 }
  0x65   :  { %2900 = shalt.err (!%p2897_p5)
}
  0x66   :  { %53 = dma.hbm_to_vmem [thread:$0]  %s3562_s2, 16, %s51_s20, [#allocation8]  }
  0x67   :  { %s3009_s22 = smov [#allocation12]   ;;  %s3010_s18 = smov [#allocation15]  }
  0x68   :  { %s72_s16 = sshll.u32 %s3009_s22, 4  ;;  %s93_s19 = sshll.u32 %s3010_s18, 4  ;;  %s73_s16 = int_to_ptr.vmem [resolvable:$true] %s72_s16  ;;  %s3172_s19 = int_to_ptr.vmem [resolvable:$true] %s93_s19 }
  0x69   :  { %s2901_s25 = scalar_lea.hbm %s3564_s4, 16 }
  0x6a   :  { %p2902_p6 = scmp.ne.s32.totalorder %s3564_s4, %s2901_s25  ;;  %p2905_p7 = scmp.lt.u32.totalorder %s2901_s25, %s3564_s4 }
  0x6c   :  { %p2907_p8 = pnand %p2905_p7, %p2902_p6 }
  0x6e   :  { %2910 = shalt.err (!%p2907_p8)
}
  0x6f   :  { %s2911_s2 = scalar_lea.vmem %s73_s16, 16  ;;  %s2915_s20 = scalar_lea.vmem %s73_s16, 32 }
  0x70   :  { %p2912_p9 = scmp.ne.s32.totalorder %s73_s16, %s2911_s2  ;;  %p2916_p10 = scmp.lt.s32.totalorder %s73_s16, %s73_s16 }
  0x71   :  { %p2917_p11 = scmp.lt.s32.totalorder %s2915_s20, %s2911_s2 }
  0x73   :  { %p2918_p12 = por %p2917_p11, %p2916_p10 }
  0x75   :  { %p2919_p13 = pnand %p2918_p12, %p2912_p9 }
  0x77   :  { %2922 = shalt.err (!%p2919_p13)
}
  0x78   :  { %75 = dma.hbm_to_vmem [thread:$0]  %s3564_s4, 16, %s73_s16, [#allocation11]  }
  0x79   :  { %s2923_s30 = scalar_lea.hbm %s3566_s6, 32 }
  0x7a   :  { %p2924_p0 = scmp.ne.s32.totalorder %s3566_s6, %s2923_s30  ;;  %p2927_p1 = scmp.lt.u32.totalorder %s2923_s30, %s3566_s6 }
  0x7c   :  { %p2929_p2 = pnand %p2927_p1, %p2924_p0 }
  0x7e   :  { %2932 = shalt.err (!%p2929_p2)
}
  0x7f   :  { %s2933_s14 = scalar_lea.vmem %s3172_s19, 32  ;;  %p2938_p4 = scmp.lt.s32.totalorder %s3172_s19, %s3172_s19 }
  0x80   :  { %p2934_p3 = scmp.ne.s32.totalorder %s3172_s19, %s2933_s14  ;;  %p2939_p5 = scmp.lt.s32.totalorder %s2933_s14, %s2933_s14 }
  0x82   :  { %p2940_p6 = por %p2939_p5, %p2938_p4 }
  0x84   :  { %p2941_p7 = pnand %p2940_p6, %p2934_p3 }
  0x86   :  { %2944 = shalt.err (!%p2941_p7)
}
  0x87   :  { %s3011_s4 = smov 16   ;;  %s3012_s5 = smov 1  }
  0x88   :  { %99 = dma.hbm_to_vmem [thread:$0]  %s3566_s6, 32, %s3172_s19, [#allocation14], %s3011_s4, %s3011_s4, %s3012_s5  }
  0x89   :  { %s3013_s21 = smov [#allocation18]   ;;  %s2945_s23 = scalar_lea.hbm %s3568_s8, 16 }
  0x8a   :  { %s118_s22 = sshll.u32 %s3013_s21, 4  ;;  %p2946_p8 = scmp.ne.s32.totalorder %s3568_s8, %s2945_s23  ;;  %s119_s22 = int_to_ptr.vmem [resolvable:$true] %s118_s22 }
  0x8b   :  { %p2949_p9 = scmp.lt.u32.totalorder %s2945_s23, %s3568_s8 }
  0x8d   :  { %p2951_p10 = pnand %p2949_p9, %p2946_p8 }
  0x8f   :  { %2954 = shalt.err (!%p2951_p10)
}
  0x90   :  { %s2955_s12 = scalar_lea.vmem %s119_s22, 16  ;;  %s2959_s6 = scalar_lea.vmem %s119_s22, 32 }
  0x91   :  { %p2956_p11 = scmp.ne.s32.totalorder %s119_s22, %s2955_s12  ;;  %p2960_p12 = scmp.lt.s32.totalorder %s119_s22, %s119_s22 }
  0x92   :  { %p2961_p13 = scmp.lt.s32.totalorder %s2959_s6, %s2955_s12 }
  0x94   :  { %p2962_p0 = por %p2961_p13, %p2960_p12 }
  0x96   :  { %p2963_p1 = pnand %p2962_p0, %p2956_p11 }
  0x98   :  { %2966 = shalt.err (!%p2963_p1)
}
  0x99   :  { %121 = dma.hbm_to_vmem [thread:$0]  %s3568_s8, 16, %s119_s22, [#allocation17]  }
  0x9a   :  { %2989 = dma.done.wait [#allocation5], 1024  }
  0x9b   :  { %2990 = vsyncadd [#allocation5], 4294966272 }
  0x9c   :  { %2991 = dma.done.wait [#allocation8], 528  }
  0x9d   :  { %2992 = vsyncadd [#allocation8], 4294966768 }
  0x9e   :  { %2993 = dma.done.wait [#allocation11], 528  }
  0x9f   :  { %2994 = vsyncadd [#allocation11], 4294966768 }
  0xa0   :  { %2995 = dma.done.wait [#allocation14], 1056  }
  0xa1   :  { %2996 = vsyncadd [#allocation14], 4294966240 }
  0xa2   :  { %2997 = dma.done.wait [#allocation17], 528  }
  0xa3   :  { %2998 = vsyncadd [#allocation17], 4294966768  ;;  %v3014_v0 = vmov 0.0|0.0   ;;  %vm3015_vm0 = vmmov 0   ;;  %v3016_v1 = vmov 0.0   ;;  %v155_v2 = vld [vmem:[#allocation7] sm:$0xff]  ;;  %v149_v16 = vlaneseq }
  0xa4   :  { %2575 = vmatprep.subr.bf16.mxu1 %v3014_v0  ;;  %2368 = vmatprep.mubr.msk.f32.mxu1 %vm3015_vm0, %v3016_v1  ;;  %v156_v3 = vld [vmem:[#allocation7 + $0x8] sm:$0xff]  ;;  %vm180_vm1 = vcmask 261120   ;;  %v157_v7 = vld [vmem:[#allocation7 + $0x10] sm:$0xff]  ;;  %v158_v8 = vld [vmem:[#allocation7 + $0x18] sm:$0xff]  ;;  %v3017_v30 = vmov 0.5   ;;  %s3018_s8 = smov 64  }
  0xa5   :  { %v160_v4 = vld [vmem:[#allocation13] sm:$0xff]  ;;  %v2567_v5 = vpack.c.bf16 %v156_v3, %v155_v2  ;;  %v161_v6 = vld [vmem:[#allocation13 + $0x8] sm:$0xff]  ;;  %v2571_v10 = vpack.c.bf16 %v158_v8, %v157_v7  ;;  %v162_v12 = vld [vmem:[#allocation13 + $0x10] sm:$0xff]  ;;  %v3240_v17 = vshrl.u32 %v149_v16, 7  ;;  %v150_v20 = vand.u32 127, %v149_v16  ;;  %s3019_s2 = smov 32  }
  0xa6   :  { %v3218_v9 = vpack.c.bf16 %v161_v6, %v160_v4  ;;  %v166_v11 = vld [vmem:[#allocation4] sm:$0xff]  ;;  %v167_v15 = vld [vmem:[#allocation4 + $0x8] sm:$0xff]  ;;  %v168_v61 = vld [vmem:[#allocation4 + $0x10] sm:$0xff]  ;;  %s3020_s20 = smov [#allocation19]   ;;  %vm2178_vm5 = vcmask 39936  }
  0xa7   :  { %v163_v13 = vld [vmem:[#allocation13 + $0x18] sm:$0xff]  ;;  %2568 = vmatprep.subr.bf16.mxu0 %v2567_v5  ;;  %2348 = vmatprep.mubr.msk.f32.mxu0 %vm180_vm1, %v166_v11  ;;  %v164_v19 = vld [vmem:[#allocation15] sm:$0x1]  ;;  %v177_v22 = vsub.s32 0, %v3240_v17  ;;  %vm151_vm2 = vcmp.ge.s32.totalorder %v150_v20, 64  ;;  %vm152_vm3 = vcmp.lt.s32.totalorder %v150_v20, 96 }
  0xa8   :  { %2570 = vmatpush3.bf16.msra.mxu0 %v2567_v5  ;;  %2577 = vmatpush3.bf16.msra.mxu1 %v3218_v9  ;;  %v3222_v14 = vpack.c.bf16 %v163_v13, %v162_v12  ;;  %v159_v18 = vld [vmem:[#allocation9] sm:$0x1]  ;;  %vm3247_vm4 = vmand %vm151_vm2, %vm152_vm3  ;;  %v169_v62 = vld [vmem:[#allocation4 + $0x18] sm:$0xff]  ;;  %s2186_s7 = sshll.u32 %s3020_s20, 4  ;;  %s2187_s7 = int_to_ptr.vmem [resolvable:$true] %s2186_s7 }
  0xa9   :  { %2572 = vmatprep.subr.bf16.mxu0 %v2571_v10  ;;  %2578 = vmatprep.subr.bf16.mxu1 %v3014_v0  ;;  %v165_v21 = vadd.f32 %v164_v19, %v159_v18  ;;  %v3254_v31 = vsel %vm3247_vm4, 1.0, %v3017_v30  ;;  %v170_v63 = vld [vmem:[#allocation4 + $0x20] sm:$0xff]  ;;  %v171_v2 = vld [vmem:[#allocation4 + $0x28] sm:$0xff]  ;;  %v172_v3 = vld [vmem:[#allocation4 + $0x30] sm:$0xff]  ;;  %s2967_s17 = scalar_lea.vmem %s2187_s7, 128  ;;  %p2972_p3 = scmp.lt.s32.totalorder %s2187_s7, %s2187_s7 }
  0xaa   :  { %v173_v4 = vld [vmem:[#allocation4 + $0x38] sm:$0xff]  ;;  %p2968_p2 = scmp.ne.s32.totalorder %s2187_s7, %s2967_s17  ;;  %p2973_p4 = scmp.lt.s32.totalorder %s2967_s17, %s2967_s17 }
  0xab   :  { %v3245_v23 = vrot.slane %v165_v21, %v177_v22 }
  0xac   :  { %2574 = vmatpush3.bf16.msra.mxu0 %v2571_v10  ;;  %2580 = vmatpush3.bf16.msra.mxu1 %v3222_v14  ;;  %p2974_p5 = por %p2973_p4, %p2972_p3 }
  0xad   :  { %2581 = vmatprep.subr.bf16.mxu1 %v3014_v0  ;;  %2587 = vmatprep.subr.bf16.mxu0 %v3014_v0 }
  0xae   :  { %p2975_p6 = pnand %p2974_p5, %p2968_p2 }
  0xaf   :  { %2349 = vmatmul.mubr.msk.f32.vlgmr.msra.gmra.mrb[0].mxu0 %vm180_vm1, %v167_v15  ;;  %2369 = vmatmul.mubr.f32.vlgmr.msra.gmra.mrb[0].mxu1 %v3016_v1 }
  0xb0   :  { %2583 = vmatpush3.bf16.msra.mxu1 %v3218_v9  ;;  %2379 = vmatprep.mubr.msk.f32.mxu1 %vm3015_vm0, %v3016_v1 }
  0xb1   :  { %2584 = vmatprep.subr.bf16.mxu1 %v3014_v0  ;;  %2589 = vmatpush3.bf16.msra.mxu0 %v3218_v9 }
  0xb2   :  { %2590 = vmatprep.subr.bf16.mxu0 %v3014_v0  ;;  %2351 = vmatprep.mubr.msk.f32.mxu0 %vm180_vm1, %v168_v61 }
  0xb3   :  { %2352 = vmatmul.mubr.msk.f32.gmra.mrb[2].mxu0 %vm180_vm1, %v169_v62 }
  0xb4   :  { %2586 = vmatpush3.bf16.msra.mxu1 %v3222_v14  ;;  %2354 = vmatprep.mubr.msk.f32.mxu0 %vm180_vm1, %v170_v63 }
  0xb5   :  { %2592 = vmatpush3.bf16.msra.mxu0 %v3222_v14  ;;  %2593 = vmatprep.subr.bf16.mxu1 %v3014_v0 }
  0xb6   :  { %2599 = vmatprep.subr.bf16.mxu0 %v3014_v0 }
  0xb7   :  { %2355 = vmatmul.mubr.msk.f32.gmra.mrb[4].mxu0 %vm180_vm1, %v171_v2 }
  0xb8   :  { %2357 = vmatprep.mubr.msk.f32.mxu0 %vm180_vm1, %v172_v3 }
  0xbb   :  { %2358 = vmatmul.mubr.msk.f32.gmra.mrb[6].mxu0 %vm180_vm1, %v173_v4 }
  0xbc   :  { %2390 = vmatprep.mubr.msk.f32.mxu0 %vm3015_vm0, %v3016_v1 }
 0x182   :  { %v2350_v25 = vpop.f32.mrb[0].mxu0  ;;  %v388_v26 = vpop.f32.mrb[0].mxu1 }
 0x183   :  { %v271_v27 = vpop.f32.mrb[1].mxu0  ;;  %v2370_v28 = vpop.f32.mrb[1].mxu1  ;;  %v277_v47 = vadd.f32 %v2350_v25, %v3245_v23 }
 0x184   :  { %v272_v29 = vadd.f32 %v271_v27, %v3245_v23 }
 0x186   :  { %v392_v32 = vadd.f32 %v388_v26, %v272_v29  ;;  %v2353_v8 = vpop.f32.mrb[2].mxu0 }
 0x187   :  { %v281_v10 = vpop.f32.mrb[3].mxu0 }
 0x188   :  { %v393_v33 = vmul.f32 %v392_v32, %v3254_v31  ;;  %v282_v18 = vadd.f32 %v281_v10, %v3245_v23 }
 0x18a   :  { %2705 = vtanh.f32 %v393_v33  ;;  %v3287_v11 = vpop.f32.mrb[4].mxu0 }
 0x18b   :  { %v3289_v12 = vpop.f32.mrb[5].mxu0 }
 0x18e   :  { %v3291_v13 = vpop.f32.mrb[6].mxu0 }
 0x18f   :  { %v3293_v15 = vpop.f32.mrb[7].mxu0 }
 0x194   :  { %v2706_v34 = vpop.eup %2705 }
 0x195   :  { %v395_v35 = vadd.f32 1.0, %v2706_v34 }
 0x197   :  { %v396_v36 = vmul.f32 0.5, %v395_v35 }
 0x199   :  { %v397_v37 = vsel %vm3247_vm4, %v2706_v34, %v396_v36 }
 0x19a   :  { %400 = vrot.lane.b32.xlu0 %v397_v37, %s3018_s8  ;;  %v398_v40 = vmul.f32 0.0, %v397_v37 }
 0x20c   :  { %v401_v38 = vpop.permute.xlu0 %400 }
 0x20d   :  { %v403_v39 = vmul.f32 %v401_v38, %v397_v37 }
 0x20f   :  { %405 = vrot.lane.b32.xlu0 %v403_v39, %s3019_s2 }
 0x281   :  { %v406_v41 = vpop.permute.xlu0 %405 }
 0x282   :  { %v408_v42 = vadd.f32 %v406_v41, %v398_v40  ;;  %v287_v40 = vadd.f32 %v2353_v8, %v3245_v23 }
 0x284   :  { %2707 = vtanh.f32 %v408_v42 }
 0x28e   :  { %v2708_v43 = vpop.eup %2707 }
 0x28f   :  { %411 = vrot.lane.b32.xlu1 %v2708_v43, %s3018_s8 }
 0x301   :  { %v412_v44 = vpop.permute.xlu1 %411 }
 0x302   :  { %v414_v45 = vmul.f32 %v412_v44, %v397_v37 }
 0x304   :  { %416 = vrot.lane.b32.xlu1 %v414_v45, %s3019_s2 }
 0x376   :  { %v417_v46 = vpop.permute.xlu1 %416 }
 0x377   :  { %419 = vst.msk [vmem:[#allocation3] sm:$0xff] %vm180_vm1, %v417_v46  ;;  %2380 = vmatmul.mubr.msk.f32.vlgmr.msra.gmra.mrb[2].mxu1 %vm180_vm1, %v417_v46 }
 0x378   :  { %2595 = vmatpush3.bf16.msra.mxu1 %v3218_v9  ;;  %2401 = vmatprep.mubr.msk.f32.mxu1 %vm3015_vm0, %v3016_v1 }
 0x379   :  { %2596 = vmatprep.subr.bf16.mxu1 %v3014_v0 }
 0x37c   :  { %2598 = vmatpush3.bf16.msra.mxu1 %v3222_v14 }
 0x37d   :  { %2605 = vmatprep.subr.bf16.mxu1 %v3014_v0 }
 0x44a   :  { %v490_v48 = vpop.f32.mrb[2].mxu1 }
 0x44b   :  { %v494_v49 = vadd.f32 %v490_v48, %v277_v47  ;;  %v2381_v50 = vpop.f32.mrb[3].mxu1 }
 0x44d   :  { %v495_v51 = vmul.f32 %v494_v49, %v3254_v31 }
 0x44f   :  { %2709 = vtanh.f32 %v495_v51 }
 0x459   :  { %v2710_v52 = vpop.eup %2709 }
 0x45a   :  { %v497_v53 = vadd.f32 1.0, %v2710_v52 }
 0x45c   :  { %v498_v54 = vmul.f32 0.5, %v497_v53 }
 0x45e   :  { %v499_v55 = vsel %vm3247_vm4, %v2710_v52, %v498_v54 }
 0x45f   :  { %502 = vrot.lane.b32.xlu0 %v499_v55, %s3018_s8  ;;  %v500_v58 = vmul.f32 %v499_v55, %v408_v42 }
 0x4d1   :  { %v503_v56 = vpop.permute.xlu0 %502 }
 0x4d2   :  { %v505_v57 = vmul.f32 %v503_v56, %v499_v55 }
 0x4d4   :  { %507 = vrot.lane.b32.xlu1 %v505_v57, %s3019_s2 }
 0x546   :  { %v508_v59 = vpop.permute.xlu1 %507 }
 0x547   :  { %v510_v60 = vadd.f32 %v508_v59, %v500_v58  ;;  %v292_v58 = vadd.f32 %v3289_v12, %v3245_v23 }
 0x549   :  { %2711 = vtanh.f32 %v510_v60 }
 0x553   :  { %v2712_v5 = vpop.eup %2711 }
 0x554   :  { %513 = vrot.lane.b32.xlu0 %v2712_v5, %s3018_s8 }
 0x5c6   :  { %v514_v6 = vpop.permute.xlu0 %513 }
 0x5c7   :  { %v516_v7 = vmul.f32 %v514_v6, %v499_v55 }
 0x5c9   :  { %518 = vrot.lane.b32.xlu1 %v516_v7, %s3019_s2 }
 0x63b   :  { %v519_v16 = vpop.permute.xlu1 %518 }
 0x63c   :  { %522 = vst.msk [vmem:[#allocation3 + $0x8] sm:$0xff] %vm180_vm1, %v519_v16  ;;  %2391 = vmatmul.mubr.msk.f32.vlgmr.msra.gmra.mrb[8].mxu0 %vm180_vm1, %v519_v16 }
 0x63d   :  { %2601 = vmatpush3.bf16.msra.mxu0 %v3218_v9  ;;  %2412 = vmatprep.mubr.msk.f32.mxu0 %vm3015_vm0, %v3016_v1 }
 0x63e   :  { %2602 = vmatprep.subr.bf16.mxu0 %v3014_v0 }
 0x641   :  { %2604 = vmatpush3.bf16.msra.mxu0 %v3222_v14 }
 0x642   :  { %2611 = vmatprep.subr.bf16.mxu0 %v3014_v0 }
 0x70f   :  { %v593_v19 = vpop.f32.mrb[8].mxu0 }
 0x710   :  { %v597_v20 = vadd.f32 %v593_v19, %v282_v18  ;;  %v2392_v21 = vpop.f32.mrb[9].mxu0 }
 0x712   :  { %v598_v25 = vmul.f32 %v597_v20, %v3254_v31  ;;  %v297_v20 = vadd.f32 %v3287_v11, %v3245_v23 }
 0x714   :  { %2713 = vtanh.f32 %v598_v25 }
 0x71e   :  { %v2714_v26 = vpop.eup %2713 }
 0x71f   :  { %v600_v27 = vadd.f32 1.0, %v2714_v26 }
 0x721   :  { %v601_v28 = vmul.f32 0.5, %v600_v27 }
 0x723   :  { %v602_v29 = vsel %vm3247_vm4, %v2714_v26, %v601_v28 }
 0x724   :  { %605 = vrot.lane.b32.xlu0 %v602_v29, %s3018_s8  ;;  %v603_v33 = vmul.f32 %v602_v29, %v510_v60 }
 0x796   :  { %v606_v30 = vpop.permute.xlu0 %605 }
 0x797   :  { %v608_v32 = vmul.f32 %v606_v30, %v602_v29 }
 0x799   :  { %610 = vrot.lane.b32.xlu1 %v608_v32, %s3019_s2 }
 0x80b   :  { %v611_v34 = vpop.permute.xlu1 %610 }
 0x80c   :  { %v613_v35 = vadd.f32 %v611_v34, %v603_v33 }
 0x80e   :  { %2715 = vtanh.f32 %v613_v35 }
 0x818   :  { %v2716_v36 = vpop.eup %2715 }
 0x819   :  { %616 = vrot.lane.b32.xlu0 %v2716_v36, %s3018_s8  ;;  %v1142_v36 = vld [vmem:[#allocation10 + $0x8] sm:$0xff] }
 0x88b   :  { %v617_v37 = vpop.permute.xlu0 %616 }
 0x88c   :  { %v619_v38 = vmul.f32 %v617_v37, %v602_v29 }
 0x88e   :  { %621 = vrot.lane.b32.xlu1 %v619_v38, %s3019_s2 }
 0x900   :  { %v622_v39 = vpop.permute.xlu1 %621 }
 0x901   :  { %625 = vst.msk [vmem:[#allocation3 + $0x10] sm:$0xff] %vm180_vm1, %v622_v39  ;;  %2402 = vmatmul.mubr.msk.f32.vlgmr.msra.gmra.mrb[4].mxu1 %vm180_vm1, %v622_v39 }
 0x902   :  { %2607 = vmatpush3.bf16.msra.mxu1 %v3218_v9  ;;  %2423 = vmatprep.mubr.msk.f32.mxu1 %vm3015_vm0, %v3016_v1 }
 0x903   :  { %2608 = vmatprep.subr.bf16.mxu1 %v3014_v0 }
 0x906   :  { %2610 = vmatpush3.bf16.msra.mxu1 %v3222_v14 }
 0x907   :  { %2617 = vmatprep.subr.bf16.mxu1 %v3014_v0 }
 0x9d4   :  { %v696_v41 = vpop.f32.mrb[4].mxu1 }
 0x9d5   :  { %v700_v42 = vadd.f32 %v696_v41, %v287_v40  ;;  %v2403_v43 = vpop.f32.mrb[5].mxu1  ;;  %v1143_v41 = vld [vmem:[#allocation10 + $0x10] sm:$0xff] }
 0x9d7   :  { %v701_v44 = vmul.f32 %v700_v42, %v3254_v31  ;;  %v1144_v42 = vld [vmem:[#allocation10 + $0x18] sm:$0xff] }
 0x9d8   :  { %v2627_v43 = vpack.c.bf16 %v1144_v42, %v1143_v41 }
 0x9d9   :  { %2717 = vtanh.f32 %v701_v44 }
 0x9e3   :  { %v2718_v45 = vpop.eup %2717 }
 0x9e4   :  { %v703_v46 = vadd.f32 1.0, %v2718_v45 }
 0x9e6   :  { %v704_v47 = vmul.f32 0.5, %v703_v46  ;;  %v1155_v46 = vld [vmem:[#allocation3 + $0x8] sm:$0xff] }
 0x9e8   :  { %v705_v48 = vsel %vm3247_vm4, %v2718_v45, %v704_v47  ;;  %v1154_v45 = vld [vmem:[#allocation3] sm:$0xff]  ;;  %v1156_v47 = vld [vmem:[#allocation3 + $0x10] sm:$0xff] }
 0x9e9   :  { %708 = vrot.lane.b32.xlu0 %v705_v48, %s3018_s8  ;;  %v706_v51 = vmul.f32 %v705_v48, %v613_v35  ;;  %v1141_v35 = vld [vmem:[#allocation10] sm:$0xff] }
 0x9ea   :  { %v2623_v37 = vpack.c.bf16 %v1142_v36, %v1141_v35 }
 0xa5b   :  { %v709_v49 = vpop.permute.xlu0 %708 }
 0xa5c   :  { %v711_v50 = vmul.f32 %v709_v49, %v705_v48 }
 0xa5e   :  { %713 = vrot.lane.b32.xlu1 %v711_v50, %s3019_s2 }
 0xad0   :  { %v714_v52 = vpop.permute.xlu1 %713 }
 0xad1   :  { %v716_v53 = vadd.f32 %v714_v52, %v706_v51  ;;  %v302_v51 = vadd.f32 %v3293_v15, %v3245_v23 }
 0xad3   :  { %2719 = vtanh.f32 %v716_v53 }
 0xadd   :  { %v2720_v54 = vpop.eup %2719 }
 0xade   :  { %719 = vrot.lane.b32.xlu0 %v2720_v54, %s3018_s8 }
 0xb50   :  { %v720_v55 = vpop.permute.xlu0 %719 }
 0xb51   :  { %v722_v56 = vmul.f32 %v720_v55, %v705_v48 }
 0xb53   :  { %724 = vrot.lane.b32.xlu1 %v722_v56, %s3019_s2 }
 0xbc5   :  { %v725_v57 = vpop.permute.xlu1 %724 }
 0xbc6   :  { %728 = vst.msk [vmem:[#allocation3 + $0x18] sm:$0xff] %vm180_vm1, %v725_v57  ;;  %2413 = vmatmul.mubr.msk.f32.vlgmr.msra.gmra.mrb[10].mxu0 %vm180_vm1, %v725_v57 }
 0xbc7   :  { %2613 = vmatpush3.bf16.msra.mxu0 %v3218_v9  ;;  %2434 = vmatprep.mubr.msk.f32.mxu0 %vm3015_vm0, %v3016_v1 }
 0xbc8   :  { %2614 = vmatprep.subr.bf16.mxu0 %v3014_v0 }
 0xbcb   :  { %2616 = vmatpush3.bf16.msra.mxu0 %v3222_v14 }
 0xbcc   :  { %2624 = vmatprep.subr.bf16.mxu0 %v2623_v37 }
 0xbcd   :  { %v1157_v48 = vld [vmem:[#allocation3 + $0x18] sm:$0xff] }
 0xc99   :  { %v799_v59 = vpop.f32.mrb[10].mxu0 }
 0xc9a   :  { %v803_v60 = vadd.f32 %v799_v59, %v292_v58  ;;  %v2414_v61 = vpop.f32.mrb[11].mxu0 }
 0xc9c   :  { %v804_v62 = vmul.f32 %v803_v60, %v3254_v31 }
 0xc9e   :  { %2721 = vtanh.f32 %v804_v62 }
 0xca8   :  { %v2722_v63 = vpop.eup %2721 }
 0xca9   :  { %v806_v2 = vadd.f32 1.0, %v2722_v63 }
 0xcab   :  { %v807_v3 = vmul.f32 0.5, %v806_v2 }
 0xcad   :  { %v808_v4 = vsel %vm3247_vm4, %v2722_v63, %v807_v3 }
 0xcae   :  { %811 = vrot.lane.b32.xlu0 %v808_v4, %s3018_s8  ;;  %v809_v7 = vmul.f32 %v808_v4, %v716_v53 }
 0xd20   :  { %v812_v5 = vpop.permute.xlu0 %811 }
 0xd21   :  { %v814_v6 = vmul.f32 %v812_v5, %v808_v4 }
 0xd23   :  { %816 = vrot.lane.b32.xlu1 %v814_v6, %s3019_s2 }
 0xd95   :  { %v817_v8 = vpop.permute.xlu1 %816 }
 0xd96   :  { %v819_v10 = vadd.f32 %v817_v8, %v809_v7 }
 0xd98   :  { %2723 = vtanh.f32 %v819_v10 }
 0xda2   :  { %v2724_v12 = vpop.eup %2723 }
 0xda3   :  { %822 = vrot.lane.b32.xlu0 %v2724_v12, %s3018_s8  ;;  %v1148_v12 = vld [vmem:[#allocation13 + $0x28] sm:$0xff] }
 0xe15   :  { %v823_v16 = vpop.permute.xlu0 %822 }
 0xe16   :  { %v825_v18 = vmul.f32 %v823_v16, %v808_v4 }
 0xe18   :  { %827 = vrot.lane.b32.xlu1 %v825_v18, %s3019_s2  ;;  %v1149_v18 = vld [vmem:[#allocation13 + $0x30] sm:$0xff] }
 0xe8a   :  { %v828_v19 = vpop.permute.xlu1 %827 }
 0xe8b   :  { %831 = vst.msk [vmem:[#allocation3 + $0x20] sm:$0xff] %vm180_vm1, %v828_v19  ;;  %2424 = vmatmul.mubr.msk.f32.vlgmr.msra.gmra.mrb[6].mxu1 %vm180_vm1, %v828_v19  ;;  %v1150_v19 = vld [vmem:[#allocation13 + $0x38] sm:$0xff] }
 0xe8c   :  { %2619 = vmatpush3.bf16.msra.mxu1 %v3218_v9  ;;  %2445 = vmatprep.mubr.msk.f32.mxu1 %vm3015_vm0, %v3016_v1 }
 0xe8d   :  { %2620 = vmatprep.subr.bf16.mxu1 %v3014_v0 }
 0xe90   :  { %2622 = vmatpush3.bf16.msra.mxu1 %v3222_v14 }
 0xe91   :  { %2631 = vmatprep.subr.bf16.mxu1 %v3014_v0 }
 0xe92   :  { %v1158_v49 = vld [vmem:[#allocation3 + $0x20] sm:$0xff] }
 0xf5e   :  { %v902_v21 = vpop.f32.mrb[6].mxu1 }
 0xf5f   :  { %v906_v25 = vadd.f32 %v902_v21, %v297_v20  ;;  %v2425_v26 = vpop.f32.mrb[7].mxu1  ;;  %v3394_v20 = vpack.c.bf16 %v1150_v19, %v1149_v18 }
 0xf61   :  { %v907_v27 = vmul.f32 %v906_v25, %v3254_v31 }
 0xf63   :  { %2725 = vtanh.f32 %v907_v27 }
 0xf6d   :  { %v2726_v28 = vpop.eup %2725 }
 0xf6e   :  { %v909_v9 = vadd.f32 1.0, %v2726_v28 }
 0xf70   :  { %v910_v29 = vmul.f32 0.5, %v909_v9  ;;  %v1152_v9 = vld [vmem:[#allocation15 + $0x1] sm:$0x1] }
 0xf72   :  { %v911_v30 = vsel %vm3247_vm4, %v2726_v28, %v910_v29  ;;  %v1145_v28 = vld [vmem:[#allocation12] sm:$0x1]  ;;  %v307_v29 = vadd.f32 %v3291_v13, %v3245_v23 }
 0xf73   :  { %914 = vrot.lane.b32.xlu0 %v911_v30, %s3018_s8  ;;  %v912_v33 = vmul.f32 %v911_v30, %v819_v10  ;;  %v1147_v10 = vld [vmem:[#allocation13 + $0x20] sm:$0xff] }
 0xf74   :  { %v3390_v16 = vpack.c.bf16 %v1148_v12, %v1147_v10 }
 0xfe5   :  { %v915_v14 = vpop.permute.xlu0 %914 }
 0xfe6   :  { %v917_v32 = vmul.f32 %v915_v14, %v911_v30 }
 0xfe8   :  { %919 = vrot.lane.b32.xlu1 %v917_v32, %s3019_s2 }
0x105a   :  { %v920_v11 = vpop.permute.xlu1 %919 }
0x105b   :  { %v922_v34 = vadd.f32 %v920_v11, %v912_v33 }
0x105d   :  { %2727 = vtanh.f32 %v922_v34 }
0x1067   :  { %v2728_v38 = vpop.eup %2727 }
0x1068   :  { %925 = vrot.lane.b32.xlu0 %v2728_v38, %s3018_s8 }
0x10da   :  { %v926_v39 = vpop.permute.xlu0 %925 }
0x10db   :  { %v928_v40 = vmul.f32 %v926_v39, %v911_v30  ;;  %v1153_v30 = vadd.f32 %v1152_v9, %v1145_v28 }
0x10dd   :  { %930 = vrot.lane.b32.xlu1 %v928_v40, %s3019_s2  ;;  %v3419_v11 = vrot.slane %v1153_v30, %v177_v22 }
0x114f   :  { %v931_v44 = vpop.permute.xlu1 %930 }
0x1150   :  { %934 = vst.msk [vmem:[#allocation3 + $0x28] sm:$0xff] %vm180_vm1, %v931_v44  ;;  %2435 = vmatmul.mubr.msk.f32.vlgmr.msra.gmra.mrb[12].mxu0 %vm180_vm1, %v931_v44 }
0x1151   :  { %2626 = vmatpush3.bf16.msra.mxu0 %v2623_v37  ;;  %2456 = vmatprep.mubr.msk.f32.mxu0 %vm180_vm1, %v1154_v45 }
0x1152   :  { %2628 = vmatprep.subr.bf16.mxu0 %v2627_v43 }
0x1155   :  { %2630 = vmatpush3.bf16.msra.mxu0 %v2627_v43 }
0x1156   :  { %2643 = vmatprep.subr.bf16.mxu0 %v3014_v0 }
0x1157   :  { %v1159_v50 = vld [vmem:[#allocation3 + $0x28] sm:$0xff] }
0x1158   :  { %2457 = vmatmul.mubr.msk.f32.vlgmr.msra.gmra.mrb[14].mxu0 %vm180_vm1, %v1155_v46 }
0x1159   :  { %2459 = vmatprep.mubr.msk.f32.mxu0 %vm180_vm1, %v1156_v47  ;;  %2645 = vmatpush3.bf16.msra.mxu0 %v3390_v16 }
0x115a   :  { %2646 = vmatprep.subr.bf16.mxu0 %v3014_v0 }
0x115c   :  { %2460 = vmatmul.mubr.msk.f32.gmra.mrb[16].mxu0 %vm180_vm1, %v1157_v48 }
0x115d   :  { %2462 = vmatprep.mubr.msk.f32.mxu0 %vm180_vm1, %v1158_v49  ;;  %2648 = vmatpush3.bf16.msra.mxu0 %v3394_v20 }
0x115e   :  { %2655 = vmatprep.subr.bf16.mxu0 %v3014_v0 }
0x1160   :  { %2463 = vmatmul.mubr.msk.f32.gmra.mrb[18].mxu0 %vm180_vm1, %v1159_v50 }
0x1223   :  { %v1005_v52 = vpop.f32.mrb[12].mxu0 }
0x1224   :  { %v1009_v53 = vadd.f32 %v1005_v52, %v302_v51  ;;  %v2436_v54 = vpop.f32.mrb[13].mxu0 }
0x1226   :  { %v1010_v55 = vmul.f32 %v1009_v53, %v3254_v31 }
0x1228   :  { %2729 = vtanh.f32 %v1010_v55 }
0x122b   :  { %v3372_v56 = vpop.f32.mrb[14].mxu0 }
0x122c   :  { %v1258_v57 = vpop.f32.mrb[15].mxu0 }
0x122f   :  { %v3374_v58 = vpop.f32.mrb[16].mxu0 }
0x1230   :  { %v3376_v59 = vpop.f32.mrb[17].mxu0 }
0x1232   :  { %v2730_v60 = vpop.eup %2729 }
0x1233   :  { %v3378_v61 = vpop.f32.mrb[18].mxu0  ;;  %v1012_v62 = vadd.f32 1.0, %v2730_v60 }
0x1234   :  { %v3380_v63 = vpop.f32.mrb[19].mxu0 }
0x1235   :  { %v1013_v15 = vmul.f32 0.5, %v1012_v62 }
0x1237   :  { %v1014_v2 = vsel %vm3247_vm4, %v2730_v60, %v1013_v15 }
0x1238   :  { %1017 = vrot.lane.b32.xlu0 %v1014_v2, %s3018_s8  ;;  %v1015_v5 = vmul.f32 %v1014_v2, %v922_v34  ;;  %v1259_v34 = vadd.f32 %v1258_v57, %v3419_v11 }
0x12aa   :  { %v1018_v3 = vpop.permute.xlu0 %1017 }
0x12ab   :  { %v1020_v4 = vmul.f32 %v1018_v3, %v1014_v2  ;;  %v1264_v3 = vadd.f32 %v3372_v56, %v3419_v11 }
0x12ad   :  { %1022 = vrot.lane.b32.xlu1 %v1020_v4, %s3019_s2 }
0x131f   :  { %v1023_v6 = vpop.permute.xlu1 %1022 }
0x1320   :  { %v3386_v7 = vadd.f32 %v1023_v6, %v1015_v5 }
0x1322   :  { %2731 = vtanh.f32 %v3386_v7 }
0x132c   :  { %v2732_v8 = vpop.eup %2731 }
0x132d   :  { %1028 = vrot.lane.b32.xlu0 %v2732_v8, %s3018_s8 }
0x139f   :  { %v1029_v21 = vpop.permute.xlu0 %1028 }
0x13a0   :  { %v1031_v25 = vmul.f32 %v1029_v21, %v1014_v2 }
0x13a2   :  { %1033 = vrot.lane.b32.xlu1 %v1031_v25, %s3019_s2 }
0x1414   :  { %v1034_v26 = vpop.permute.xlu1 %1033 }
0x1415   :  { %1037 = vst.msk [vmem:[#allocation3 + $0x30] sm:$0xff] %vm180_vm1, %v1034_v26  ;;  %2446 = vmatmul.mubr.msk.f32.vlgmr.msra.gmra.mrb[8].mxu1 %vm180_vm1, %v1034_v26 }
0x1416   :  { %2633 = vmatpush3.bf16.msra.mxu1 %v3390_v16  ;;  %2476 = vmatprep.mubr.msk.f32.mxu1 %vm3015_vm0, %v3016_v1 }
0x1417   :  { %2634 = vmatprep.subr.bf16.mxu1 %v3014_v0 }
0x141a   :  { %2636 = vmatpush3.bf16.msra.mxu1 %v3394_v20 }
0x141b   :  { %2637 = vmatprep.subr.bf16.mxu1 %v3014_v0 }
0x141c   :  { %v1160_v27 = vld [vmem:[#allocation3 + $0x30] sm:$0xff] }
0x141d   :  { %2477 = vmatmul.mubr.f32.vlgmr.msra.gmra.mrb[10].mxu1 %v3016_v1  ;;  %2465 = vmatprep.mubr.msk.f32.mxu0 %vm180_vm1, %v1160_v27 }
0x141e   :  { %2639 = vmatpush3.bf16.msra.mxu1 %v3390_v16  ;;  %2487 = vmatprep.mubr.msk.f32.mxu1 %vm3015_vm0, %v3016_v1 }
0x141f   :  { %2640 = vmatprep.subr.bf16.mxu1 %v3014_v0 }
0x1422   :  { %2642 = vmatpush3.bf16.msra.mxu1 %v3394_v20 }
0x1423   :  { %2649 = vmatprep.subr.bf16.mxu1 %v3014_v0 }
0x14e8   :  { %v1108_v14 = vpop.f32.mrb[8].mxu1 }
0x14e9   :  { %v1112_v32 = vadd.f32 %v1108_v14, %v307_v29  ;;  %v2447_v33 = vpop.f32.mrb[9].mxu1 }
0x14eb   :  { %v1113_v22 = vmul.f32 %v1112_v32, %v3254_v31 }
0x14f0   :  { %v1372_v35 = vpop.f32.mrb[10].mxu1 }
0x14f1   :  { %v1376_v36 = vadd.f32 %v1372_v35, %v1259_v34  ;;  %v2478_v37 = vpop.f32.mrb[11].mxu1  ;;  %v1269_v34 = vadd.f32 %v3376_v59, %v3419_v11 }
0x14f3   :  { %v1377_v38 = vmul.f32 %v1376_v36, %v3254_v31 }
0x14f5   :  { %2733 = vtanh.f32 %v1377_v38 }
0x14f6   :  { %2735 = vtanh.f32 %v1113_v22 }
0x14ff   :  { %v2734_v39 = vpop.eup %2733 }
0x1500   :  { %v1379_v40 = vadd.f32 1.0, %v2734_v39  ;;  %v2736_v45 = vpop.eup %2735 }
0x1501   :  { %v1115_v46 = vadd.f32 1.0, %v2736_v45 }
0x1502   :  { %v1380_v41 = vmul.f32 0.5, %v1379_v40 }
0x1503   :  { %v1116_v48 = vmul.f32 0.5, %v1115_v46 }
0x1504   :  { %v1381_v23 = vsel %vm3247_vm4, %v2734_v39, %v1380_v41 }
0x1505   :  { %1384 = vrot.lane.b32.xlu0 %v1381_v23, %s3018_s8  ;;  %v1382_v42 = vmul.f32 0.0, %v1381_v23  ;;  %v1117_v49 = vsel %vm3247_vm4, %v2736_v45, %v1116_v48 }
0x1506   :  { %v1118_v55 = vmul.f32 %v1117_v49, %v3386_v7 }
0x1577   :  { %v1385_v13 = vpop.permute.xlu0 %1384 }
0x1578   :  { %v1387_v17 = vmul.f32 %v1385_v13, %v1381_v23 }
0x157a   :  { %1389 = vrot.lane.b32.xlu1 %v1387_v17, %s3019_s2 }
0x15ec   :  { %v1390_v43 = vpop.permute.xlu1 %1389 }
0x15ed   :  { %v1392_v44 = vadd.f32 %v1390_v43, %v1382_v42 }
0x15ef   :  { %2737 = vtanh.f32 %v1392_v44 }
0x15f9   :  { %v2738_v47 = vpop.eup %2737 }
0x15fa   :  { %1395 = vrot.lane.b32.xlu0 %v2738_v47, %s3018_s8  ;;  %v1274_v47 = vadd.f32 %v3374_v58, %v3419_v11 }
0x15fe   :  { %1120 = vrot.lane.b32.xlu0 %v1117_v49, %s3018_s8 }
0x166c   :  { %v1396_v50 = vpop.permute.xlu0 %1395 }
0x166d   :  { %v1398_v51 = vmul.f32 %v1396_v50, %v1381_v23 }
0x166f   :  { %1401 = vrot.lane.b32.xlu1 %v1398_v51, %s3019_s2 }
0x1670   :  { %v1121_v52 = vpop.permute.xlu0 %1120 }
0x1671   :  { %v1123_v53 = vmul.f32 %v1121_v52, %v1117_v49 }
0x1673   :  { %1125 = vrot.lane.b32.xlu0 %v1123_v53, %s3019_s2 }
0x16e1   :  { %v1402_v54 = vpop.permute.xlu1 %1401 }
0x16e2   :  { %2488 = vmatmul.mubr.msk.f32.vlgmr.msra.gmra.mrb[12].mxu1 %vm180_vm1, %v1402_v54 }
0x16e3   :  { %2651 = vmatpush3.bf16.msra.mxu1 %v3390_v16  ;;  %2509 = vmatprep.mubr.msk.f32.mxu1 %vm3015_vm0, %v3016_v1 }
0x16e4   :  { %2652 = vmatprep.subr.bf16.mxu1 %v3014_v0 }
0x16e5   :  { %v1126_v57 = vpop.permute.xlu0 %1125 }
0x16e6   :  { %v1128_v60 = vadd.f32 %v1126_v57, %v1118_v55 }
0x16e7   :  { %2654 = vmatpush3.bf16.msra.mxu1 %v3394_v20 }
0x16e8   :  { %2739 = vtanh.f32 %v1128_v60  ;;  %2661 = vmatprep.subr.bf16.mxu1 %v3014_v0 }
0x16f2   :  { %v2740_v62 = vpop.eup %2739 }
0x16f3   :  { %1131 = vrot.lane.b32.xlu0 %v2740_v62, %s3018_s8 }
0x1765   :  { %v1132_v15 = vpop.permute.xlu0 %1131 }
0x1766   :  { %v1134_v2 = vmul.f32 %v1132_v15, %v1117_v49 }
0x1768   :  { %1136 = vrot.lane.b32.xlu0 %v1134_v2, %s3019_s2 }
0x17b5   :  { %v1471_v4 = vpop.f32.mrb[12].mxu1 }
0x17b6   :  { %v1475_v5 = vadd.f32 %v1471_v4, %v1264_v3  ;;  %v2489_v6 = vpop.f32.mrb[13].mxu1 }
0x17b7   :  { %v1279_v6 = vadd.f32 %v3380_v63, %v3419_v11 }
0x17b8   :  { %v1476_v7 = vmul.f32 %v1475_v5, %v3254_v31 }
0x17ba   :  { %2741 = vtanh.f32 %v1476_v7 }
0x17c4   :  { %v2742_v8 = vpop.eup %2741 }
0x17c5   :  { %v1478_v10 = vadd.f32 1.0, %v2742_v8 }
0x17c7   :  { %v1479_v12 = vmul.f32 0.5, %v1478_v10 }
0x17c9   :  { %v1480_v18 = vsel %vm3247_vm4, %v2742_v8, %v1479_v12 }
0x17ca   :  { %1483 = vrot.lane.b32.xlu1 %v1480_v18, %s3018_s8  ;;  %v1481_v26 = vmul.f32 %v1480_v18, %v1392_v44 }
0x17da   :  { %v1137_v19 = vpop.permute.xlu0 %1136 }
0x17db   :  { %1140 = vst.msk [vmem:[#allocation3 + $0x38] sm:$0xff] %vm180_vm1, %v1137_v19 }
0x17e2   :  { %v1161_v21 = vld [vmem:[#allocation3 + $0x38] sm:$0xff] }
0x17e3   :  { %2466 = vmatmul.mubr.msk.f32.gmra.mrb[20].mxu0 %vm180_vm1, %v1161_v21 }
0x17e4   :  { %2498 = vmatprep.mubr.msk.f32.mxu0 %vm3015_vm0, %v3016_v1 }
0x183c   :  { %v1484_v56 = vpop.permute.xlu1 %1483 }
0x183d   :  { %v1486_v25 = vmul.f32 %v1484_v56, %v1480_v18 }
0x183f   :  { %1488 = vrot.lane.b32.xlu1 %v1486_v25, %s3019_s2 }
0x18b1   :  { %v1489_v27 = vpop.permute.xlu1 %1488 }
0x18b2   :  { %v1491_v28 = vadd.f32 %v1489_v27, %v1481_v26 }
0x18b4   :  { %2743 = vtanh.f32 %v1491_v28 }
0x18b6   :  { %v3455_v9 = vpop.f32.mrb[20].mxu0 }
0x18b7   :  { %v3457_v29 = vpop.f32.mrb[21].mxu0 }
0x18be   :  { %v2744_v30 = vpop.eup %2743 }
0x18bf   :  { %1494 = vrot.lane.b32.xlu1 %v2744_v30, %s3018_s8 }
0x1931   :  { %v1495_v14 = vpop.permute.xlu1 %1494 }
0x1932   :  { %v1497_v32 = vmul.f32 %v1495_v14, %v1480_v18 }
0x1934   :  { %1500 = vrot.lane.b32.xlu1 %v1497_v32, %s3019_s2 }
0x19a6   :  { %v1501_v33 = vpop.permute.xlu1 %1500 }
0x19a7   :  { %2499 = vmatmul.mubr.msk.f32.vlgmr.msra.gmra.mrb[22].mxu0 %vm180_vm1, %v1501_v33 }
0x19a8   :  { %2657 = vmatpush3.bf16.msra.mxu0 %v3390_v16  ;;  %2520 = vmatprep.mubr.msk.f32.mxu0 %vm3015_vm0, %v3016_v1 }
0x19a9   :  { %2658 = vmatprep.subr.bf16.mxu0 %v3014_v0 }
0x19ac   :  { %2660 = vmatpush3.bf16.msra.mxu0 %v3394_v20 }
0x19ad   :  { %2667 = vmatprep.subr.bf16.mxu0 %v3014_v0 }
0x1a7a   :  { %v1570_v35 = vpop.f32.mrb[22].mxu0 }
0x1a7b   :  { %v1574_v36 = vadd.f32 %v1570_v35, %v1269_v34  ;;  %v2500_v37 = vpop.f32.mrb[23].mxu0  ;;  %v1284_v34 = vadd.f32 %v3378_v61, %v3419_v11 }
0x1a7d   :  { %v1575_v38 = vmul.f32 %v1574_v36, %v3254_v31 }
0x1a7f   :  { %2745 = vtanh.f32 %v1575_v38 }
0x1a89   :  { %v2746_v39 = vpop.eup %2745 }
0x1a8a   :  { %v1577_v40 = vadd.f32 1.0, %v2746_v39 }
0x1a8c   :  { %v1578_v41 = vmul.f32 0.5, %v1577_v40 }
0x1a8e   :  { %v1579_v23 = vsel %vm3247_vm4, %v2746_v39, %v1578_v41 }
0x1a8f   :  { %1582 = vrot.lane.b32.xlu0 %v1579_v23, %s3018_s8  ;;  %v1580_v22 = vmul.f32 %v1579_v23, %v1491_v28 }
0x1b01   :  { %v1583_v13 = vpop.permute.xlu0 %1582 }
0x1b02   :  { %v1585_v17 = vmul.f32 %v1583_v13, %v1579_v23 }
0x1b04   :  { %1587 = vrot.lane.b32.xlu1 %v1585_v17, %s3019_s2 }
0x1b76   :  { %v1588_v59 = vpop.permute.xlu1 %1587 }
0x1b77   :  { %v1590_v42 = vadd.f32 %v1588_v59, %v1580_v22 }
0x1b79   :  { %2747 = vtanh.f32 %v1590_v42 }
0x1b83   :  { %v2748_v43 = vpop.eup %2747 }
0x1b84   :  { %1593 = vrot.lane.b32.xlu0 %v2748_v43, %s3018_s8 }
0x1bf6   :  { %v1594_v44 = vpop.permute.xlu0 %1593 }
0x1bf7   :  { %v1596_v45 = vmul.f32 %v1594_v44, %v1579_v23  ;;  %v1289_v44 = vadd.f32 %v3457_v29, %v3419_v11 }
0x1bf9   :  { %1599 = vrot.lane.b32.xlu1 %v1596_v45, %s3019_s2 }
0x1c6b   :  { %v1600_v46 = vpop.permute.xlu1 %1599 }
0x1c6c   :  { %2510 = vmatmul.mubr.msk.f32.vlgmr.msra.gmra.mrb[14].mxu1 %vm180_vm1, %v1600_v46 }
0x1c6d   :  { %2663 = vmatpush3.bf16.msra.mxu1 %v3390_v16  ;;  %2531 = vmatprep.mubr.msk.f32.mxu1 %vm3015_vm0, %v3016_v1 }
0x1c6e   :  { %2664 = vmatprep.subr.bf16.mxu1 %v3014_v0 }
0x1c71   :  { %2666 = vmatpush3.bf16.msra.mxu1 %v3394_v20 }
0x1c72   :  { %2673 = vmatprep.subr.bf16.mxu1 %v3014_v0 }
0x1d3f   :  { %v1669_v48 = vpop.f32.mrb[14].mxu1 }
0x1d40   :  { %v1673_v49 = vadd.f32 %v1669_v48, %v1274_v47  ;;  %v2511_v50 = vpop.f32.mrb[15].mxu1 }
0x1d42   :  { %v1674_v51 = vmul.f32 %v1673_v49, %v3254_v31 }
0x1d44   :  { %2749 = vtanh.f32 %v1674_v51 }
0x1d4e   :  { %v2750_v52 = vpop.eup %2749 }
0x1d4f   :  { %v1676_v53 = vadd.f32 1.0, %v2750_v52 }
0x1d51   :  { %v1677_v54 = vmul.f32 0.5, %v1676_v53 }
0x1d53   :  { %v1678_v55 = vsel %vm3247_vm4, %v2750_v52, %v1677_v54 }
0x1d54   :  { %1681 = vrot.lane.b32.xlu0 %v1678_v55, %s3018_s8  ;;  %v1679_v62 = vmul.f32 %v1678_v55, %v1590_v42 }
0x1dc6   :  { %v1682_v57 = vpop.permute.xlu0 %1681 }
0x1dc7   :  { %v1684_v60 = vmul.f32 %v1682_v57, %v1678_v55 }
0x1dc9   :  { %1686 = vrot.lane.b32.xlu1 %v1684_v60, %s3019_s2 }
0x1e3b   :  { %v1687_v58 = vpop.permute.xlu1 %1686 }
0x1e3c   :  { %v1689_v15 = vadd.f32 %v1687_v58, %v1679_v62 }
0x1e3e   :  { %2751 = vtanh.f32 %v1689_v15 }
0x1e48   :  { %v2752_v2 = vpop.eup %2751 }
0x1e49   :  { %1692 = vrot.lane.b32.xlu0 %v2752_v2, %s3018_s8 }
0x1ebb   :  { %v1693_v3 = vpop.permute.xlu0 %1692 }
0x1ebc   :  { %v1695_v4 = vmul.f32 %v1693_v3, %v1678_v55 }
0x1ebe   :  { %1698 = vrot.lane.b32.xlu1 %v1695_v4, %s3019_s2 }
0x1f30   :  { %v1699_v5 = vpop.permute.xlu1 %1698 }
0x1f31   :  { %2521 = vmatmul.mubr.msk.f32.vlgmr.msra.gmra.mrb[24].mxu0 %vm180_vm1, %v1699_v5 }
0x1f32   :  { %2669 = vmatpush3.bf16.msra.mxu0 %v3390_v16  ;;  %2542 = vmatprep.mubr.msk.f32.mxu0 %vm3015_vm0, %v3016_v1 }
0x1f33   :  { %2670 = vmatprep.subr.bf16.mxu0 %v3014_v0 }
0x1f36   :  { %2672 = vmatpush3.bf16.msra.mxu0 %v3394_v20 }
0x1f37   :  { %2679 = vmatprep.subr.bf16.mxu0 %v3014_v0 }
0x2004   :  { %v1768_v7 = vpop.f32.mrb[24].mxu0 }
0x2005   :  { %v1772_v8 = vadd.f32 %v1768_v7, %v1279_v6  ;;  %v2522_v10 = vpop.f32.mrb[25].mxu0 }
0x2007   :  { %v1773_v12 = vmul.f32 %v1772_v8, %v3254_v31 }
0x2009   :  { %2753 = vtanh.f32 %v1773_v12 }
0x2013   :  { %v2754_v18 = vpop.eup %2753 }
0x2014   :  { %v1775_v19 = vadd.f32 1.0, %v2754_v18 }
0x2016   :  { %v1776_v21 = vmul.f32 0.5, %v1775_v19 }
0x2018   :  { %v1777_v56 = vsel %vm3247_vm4, %v2754_v18, %v1776_v21  ;;  %v2092_v21 = vld [vmem:[#allocation16] sm:$0xff] }
0x2019   :  { %1780 = vrot.lane.b32.xlu0 %v1777_v56, %s3018_s8  ;;  %v1778_v27 = vmul.f32 %v1777_v56, %v1689_v15  ;;  %v1294_v15 = vadd.f32 %v3455_v9, %v3419_v11 }
0x208b   :  { %v1781_v25 = vpop.permute.xlu0 %1780 }
0x208c   :  { %v1783_v26 = vmul.f32 %v1781_v25, %v1777_v56 }
0x208e   :  { %1785 = vrot.lane.b32.xlu1 %v1783_v26, %s3019_s2  ;;  %v2095_v26 = vld [vmem:[#allocation16 + $0x18] sm:$0xff] }
0x2100   :  { %v1786_v63 = vpop.permute.xlu1 %1785 }
0x2101   :  { %v1788_v28 = vadd.f32 %v1786_v63, %v1778_v27 }
0x2103   :  { %2755 = vtanh.f32 %v1788_v28 }
0x210d   :  { %v2756_v30 = vpop.eup %2755 }
0x210e   :  { %1791 = vrot.lane.b32.xlu0 %v2756_v30, %s3018_s8 }
0x2180   :  { %v1792_v14 = vpop.permute.xlu0 %1791 }
0x2181   :  { %v1794_v32 = vmul.f32 %v1792_v14, %v1777_v56  ;;  %v2093_v56 = vld [vmem:[#allocation16 + $0x8] sm:$0xff]  ;;  %v2229_v14 = vld [vmem:[#allocation18] ss:$0 sm:$0xff] }
0x2182   :  { %v2680_v25 = vpack.c.bf16 %v2093_v56, %v2092_v21 }
0x2183   :  { %1797 = vrot.lane.b32.xlu1 %v1794_v32, %s3019_s2 }
0x21f5   :  { %v1798_v33 = vpop.permute.xlu1 %1797 }
0x21f6   :  { %2532 = vmatmul.mubr.msk.f32.vlgmr.msra.gmra.mrb[16].mxu1 %vm180_vm1, %v1798_v33 }
0x21f7   :  { %2675 = vmatpush3.bf16.msra.mxu1 %v3390_v16  ;;  %2553 = vmatprep.mubr.msk.f32.mxu1 %vm3015_vm0, %v3016_v1 }
0x21f8   :  { %2676 = vmatprep.subr.bf16.mxu1 %v3014_v0 }
0x21fb   :  { %2678 = vmatpush3.bf16.msra.mxu1 %v3394_v20 }
0x22c9   :  { %v1867_v35 = vpop.f32.mrb[16].mxu1 }
0x22ca   :  { %v1871_v36 = vadd.f32 %v1867_v35, %v1284_v34  ;;  %v2533_v37 = vpop.f32.mrb[17].mxu1 }
0x22cc   :  { %v1872_v38 = vmul.f32 %v1871_v36, %v3254_v31 }
0x22ce   :  { %2757 = vtanh.f32 %v1872_v38 }
0x22d8   :  { %v2758_v39 = vpop.eup %2757 }
0x22d9   :  { %v1874_v40 = vadd.f32 1.0, %v2758_v39 }
0x22db   :  { %v1875_v41 = vmul.f32 0.5, %v1874_v40 }
0x22dd   :  { %v1876_v16 = vsel %vm3247_vm4, %v2758_v39, %v1875_v41 }
0x22de   :  { %1879 = vrot.lane.b32.xlu0 %v1876_v16, %s3018_s8  ;;  %v1877_v20 = vmul.f32 %v1876_v16, %v1788_v28 }
0x2350   :  { %v1880_v23 = vpop.permute.xlu0 %1879 }
0x2351   :  { %v1882_v13 = vmul.f32 %v1880_v23, %v1876_v16 }
0x2353   :  { %1884 = vrot.lane.b32.xlu1 %v1882_v13, %s3019_s2 }
0x23c5   :  { %v1885_v61 = vpop.permute.xlu1 %1884 }
0x23c6   :  { %v1887_v17 = vadd.f32 %v1885_v61, %v1877_v20 }
0x23c8   :  { %2759 = vtanh.f32 %v1887_v17 }
0x23d2   :  { %v2760_v22 = vpop.eup %2759 }
0x23d3   :  { %1890 = vrot.lane.b32.xlu0 %v2760_v22, %s3018_s8 }
0x2445   :  { %v1891_v59 = vpop.permute.xlu0 %1890 }
0x2446   :  { %v1893_v42 = vmul.f32 %v1891_v59, %v1876_v16 }
0x2448   :  { %1896 = vrot.lane.b32.xlu1 %v1893_v42, %s3019_s2 }
0x24ba   :  { %v1897_v43 = vpop.permute.xlu1 %1896 }
0x24bb   :  { %2543 = vmatmul.mubr.msk.f32.vlgmr.msra.gmra.mrb[26].mxu0 %vm180_vm1, %v1897_v43 }
0x24bc   :  { %2564 = vmatprep.mubr.msk.f32.mxu0 %vm3015_vm0, %v3016_v1  ;;  %2681 = vmatpush3.bf16.msra.mxu0 %v2680_v25 }
0x24bd   :  { %2682 = vmatprep.subr.bf16.mxu0 %v3014_v0 }
0x258e   :  { %v1966_v45 = vpop.f32.mrb[26].mxu0 }
0x258f   :  { %v1970_v46 = vadd.f32 %v1966_v45, %v1289_v44  ;;  %v2544_v47 = vpop.f32.mrb[27].mxu0 }
0x2591   :  { %v1971_v48 = vmul.f32 %v1970_v46, %v3254_v31 }
0x2593   :  { %2761 = vtanh.f32 %v1971_v48 }
0x259d   :  { %v2762_v49 = vpop.eup %2761 }
0x259e   :  { %v1973_v50 = vadd.f32 1.0, %v2762_v49 }
0x25a0   :  { %v1974_v51 = vmul.f32 0.5, %v1973_v50 }
0x25a2   :  { %v1975_v52 = vsel %vm3247_vm4, %v2762_v49, %v1974_v51 }
0x25a3   :  { %1978 = vrot.lane.b32.xlu0 %v1975_v52, %s3018_s8  ;;  %v1976_v1 = vmul.f32 %v1975_v52, %v1887_v17 }
0x2615   :  { %v1979_v53 = vpop.permute.xlu0 %1978 }
0x2616   :  { %v1981_v54 = vmul.f32 %v1979_v53, %v1975_v52 }
0x2618   :  { %1983 = vrot.lane.b32.xlu1 %v1981_v54, %s3019_s2 }
0x268a   :  { %v1984_v29 = vpop.permute.xlu1 %1983 }
0x268b   :  { %v1986_v55 = vadd.f32 %v1984_v29, %v1976_v1 }
0x268d   :  { %2763 = vtanh.f32 %v1986_v55 }
0x2697   :  { %v2764_v57 = vpop.eup %2763 }
0x2698   :  { %1989 = vrot.lane.b32.xlu0 %v2764_v57, %s3018_s8 }
0x270a   :  { %v1990_v60 = vpop.permute.xlu0 %1989 }
0x270b   :  { %v1992_v62 = vmul.f32 %v1990_v60, %v1975_v52 }
0x270d   :  { %1995 = vrot.lane.b32.xlu1 %v1992_v62, %s3019_s2 }
0x277f   :  { %v1996_v58 = vpop.permute.xlu1 %1995 }
0x2780   :  { %2554 = vmatmul.mubr.msk.f32.vlgmr.msra.gmra.mrb[18].mxu1 %vm180_vm1, %v1996_v58 }
0x2853   :  { %v2065_v2 = vpop.f32.mrb[18].mxu1 }
0x2854   :  { %v2069_v3 = vadd.f32 %v2065_v2, %v1294_v15  ;;  %v2555_v4 = vpop.f32.mrb[19].mxu1 }
0x2856   :  { %v2070_v5 = vmul.f32 %v2069_v3, %v3254_v31  ;;  %v2094_v31 = vld [vmem:[#allocation16 + $0x10] sm:$0xff] }
0x2857   :  { %v2683_v27 = vpack.c.bf16 %v2095_v26, %v2094_v31 }
0x2858   :  { %2765 = vtanh.f32 %v2070_v5 }
0x2859   :  { %2684 = vmatpush3.bf16.msra.mxu0 %v2683_v27 }
0x2862   :  { %v2766_v6 = vpop.eup %2765 }
0x2863   :  { %v2072_v7 = vadd.f32 1.0, %v2766_v6 }
0x2865   :  { %v2073_v8 = vmul.f32 0.5, %v2072_v7 }
0x2867   :  { %v2074_v10 = vsel %vm3247_vm4, %v2766_v6, %v2073_v8 }
0x2868   :  { %2077 = vrot.lane.b32.xlu0 %v2074_v10, %s3018_s8  ;;  %v2075_v19 = vmul.f32 %v2074_v10, %v1986_v55 }
0x28da   :  { %v2078_v12 = vpop.permute.xlu0 %2077 }
0x28db   :  { %v2080_v18 = vmul.f32 %v2078_v12, %v2074_v10 }
0x28dd   :  { %2082 = vrot.lane.b32.xlu1 %v2080_v18, %s3019_s2 }
0x294f   :  { %v2083_v11 = vpop.permute.xlu1 %2082 }
0x2950   :  { %v2085_v9 = vadd.f32 %v2083_v11, %v2075_v19 }
0x2952   :  { %2767 = vtanh.f32 %v2085_v9 }
0x295c   :  { %v2768_v24 = vpop.eup %2767 }
0x295d   :  { %2088 = vrot.lane.b32.xlu0 %v2768_v24, %s3018_s8 }
0x29cf   :  { %v2089_v63 = vpop.permute.xlu0 %2088 }
0x29d0   :  { %v2091_v28 = vmul.f32 %v2089_v63, %v2074_v10 }
0x29d2   :  { %2104 = vrot.lane.b32.xlu1 %v2091_v28, %s3019_s2 }
0x2a44   :  { %v2105_v30 = vpop.permute.xlu1 %2104 }
0x2a45   :  { %2565 = vmatmul.mubr.msk.f32.vlgmr.msra.gmra.mrb[28].mxu0 %vm180_vm1, %v2105_v30 }
0x2b18   :  { %v2174_v32 = vpop.f32.mrb[28].mxu0 }
0x2b19   :  { %v2175_v33 = vadd.f32 %v2229_v14, %v2174_v32  ;;  %v2566_v34 = vpop.f32.mrb[29].mxu0 }
0x2b1b   :  { %2179 = vst.msk [vmem:[#allocation19] sm:$0xff] %vm2178_vm5, %v2175_v33 }
0x2b1c   :  { %2978 = shalt.err (!%p2975_p6)
}
0x2b1d   :  { %s2979_s30 = scalar_lea.hbm %s3569_s9, 128 }
0x2b1e   :  { %p2980_p7 = scmp.ne.s32.totalorder %s3569_s9, %s2979_s30  ;;  %p2983_p8 = scmp.lt.u32.totalorder %s2979_s30, %s3569_s9 }
0x2b20   :  { %p2985_p9 = pnand %p2983_p8, %p2980_p7 }
0x2b22   :  { %2988 = shalt.err (!%p2985_p9)
}
0x2b23   :  { %2189 = dma.vmem_to_hbm [thread:$0]  %s2187_s7, 128, %s3569_s9, [#allocation6]  }
0x2b24   :  { %2999 = dma.done.wait [#allocation6], 128  }
0x2b25   :  { %3000 = vsyncadd [#allocation6], 4294967168 }
0x2b26   :  { %2193 = vsyncpa [#allocation5], 1 }
0x2b27   :  { %2194 = vsyncpa [#allocation8], 1 }
0x2b28   :  { %2195 = vsyncpa [#allocation11], 1 }
0x2b29   :  { %2196 = vsyncpa [#allocation14], 1 }
0x2b2a   :  { %2197 = vsyncpa [#allocation17], 1 }
0x2b2b   :  { %2198 = vsyncpa [#allocation6], 1 }

</bundles_post_ra>
